<compile_context>
chip_gen: v7x
topology: tpu7x:2x2x1
jax: 0.10.0
libtpu: 0.0.40
codegen_flags: <defaults>
</compile_context>

<pallas_src>
import math

import jax
import jax.numpy as jnp
from jax.experimental import pallas as pl
from jax.experimental.pallas import tpu as pltpu


def _round_up(x, m):
    return ((x + m - 1) // m) * m


def _pad2(a, rows, cols):
    """Zero-pad a 2-D array up to (rows, cols)."""
    return jnp.pad(a, ((0, rows - a.shape[0]), (0, cols - a.shape[1])))


def _choose_batch_tile(B, batch_tile):
    B8 = _round_up(max(B, 1), 8)
    tb = min(_round_up(max(batch_tile, 8), 8), B8)
    if B8 > 512 and tb >= 256:
        # v6e: multiples of 256 fill the MXU M-dim; v7x: >=2 grid steps so both
        # TensorCores get work under "parallel" dimension semantics.
        tb = min(tb, _round_up((B8 + 1) // 2, 256))
        tb = max(256, (tb // 256) * 256)
    return tb


# ----------------------------------------------------------------------------
# Kernel
# ----------------------------------------------------------------------------
def make_cvae_kernel(num_layers, Lp, Xp, mxu_dtype):
    """Fused CVAE forward kernel (padded feature dims Lp/Xp are 128-multiples)."""

    def kernel(*refs):
        idx = 0
        x_ref = refs[idx]; idx += 1        # (TB, X_dim)
        c_ref = refs[idx]; idx += 1        # (TB, num_cond)
        eps_ref = refs[idx]; idx += 1      # (TB, Lp)   ~ N(0,1), zero-padded lanes

        # encoder
        w0x_ref = refs[idx]; idx += 1      # (X_dim, Hd)     bf16
        w0c_ref = refs[idx]; idx += 1      # (num_cond, Hd)  bf16
        b0_ref = refs[idx]; idx += 1       # (1, Hd)         f32
        enc_hidden = []
        for _ in range(num_layers - 1):
            enc_hidden.append((refs[idx], refs[idx + 1]))
            idx += 2
        wh_ref = refs[idx]; idx += 1       # (Hd, 2*Lp)  fused, 128-aligned mu|logvar
        bh_ref = refs[idx]; idx += 1       # (1, 2*Lp)

        # decoder (latent|cond concat split into z-part and cond-part)
        v0z_ref = refs[idx]; idx += 1      # (Lp, Hd)
        v0c_ref = refs[idx]; idx += 1      # (num_cond, Hd)
        c0_ref = refs[idx]; idx += 1       # (1, Hd)
        dec_hidden = []
        for _ in range(num_layers - 1):
            dec_hidden.append((refs[idx], refs[idx + 1]))
            idx += 2
        vout_ref = refs[idx]; idx += 1     # (Hd, Xp)
        cout_ref = refs[idx]; idx += 1     # (1, Xp)

        out_ref = refs[idx]                # (TB, Xp + 2*Lp)  packed recon|mu|logvar

        f32 = jnp.float32
        mxu = mxu_dtype

        x = x_ref[...].astype(mxu)
        cond = c_ref[...].astype(mxu)
        eps = eps_ref[...].astype(f32)

        # ---------------- Encoder ----------------
        # x|cond concat realized as two accumulating matmuls (no wrapper concat).
        h = jnp.dot(x, w0x_ref[...], preferred_element_type=f32)
        h = h + jnp.dot(cond, w0c_ref[...], preferred_element_type=f32)
        h = jnp.maximum(h + b0_ref[...], 0.0)
        for w_ref, b_ref in enc_hidden:
            h = jnp.maximum(
                jnp.dot(h.astype(mxu), w_ref[...], preferred_element_type=f32)
                + b_ref[...],
                0.0,
            )
        head = (
            jnp.dot(h.astype(mxu), wh_ref[...], preferred_element_type=f32)
            + bh_ref[...]
        )
        mu = head[:, :Lp]          # 128-lane-aligned split (no XLU shuffles)
        logvar = head[:, Lp:]

        # ------------- Reparameterization ---------
        std = jnp.exp(0.5 * logvar)
        latent = eps * std + mu    # padded lanes: logvar=0, mu=0, eps=0 -> latent=0

        # ---------------- Decoder ----------------
        g = jnp.dot(latent.astype(mxu), v0z_ref[...], preferred_element_type=f32)
        g = g + jnp.dot(cond, v0c_ref[...], preferred_element_type=f32)
        g = jnp.maximum(g + c0_ref[...], 0.0)
        for w_ref, b_ref in dec_hidden:
            g = jnp.maximum(
                jnp.dot(g.astype(mxu), w_ref[...], preferred_element_type=f32)
                + b_ref[...],
                0.0,
            )
        recon = (
            jnp.dot(g.astype(mxu), vout_ref[...], preferred_element_type=f32)
            + cout_ref[...]
        )

        # two static, 128-lane-aligned stores (no in-kernel concatenate)
        out_ref[:, :Xp] = recon.astype(out_ref.dtype)
        out_ref[:, Xp:] = head.astype(out_ref.dtype)

    return kernel


# ----------------------------------------------------------------------------
# Parameter initialization (mimics PyTorch nn.Linear default init, stored (in, out))
# ----------------------------------------------------------------------------
def _linear_init(key, fan_in, fan_out):
    kw, kb = jax.random.split(key)
    bound = 1.0 / math.sqrt(fan_in)
    w = jax.random.uniform(kw, (fan_in, fan_out), jnp.float32, -bound, bound)
    b = jax.random.uniform(kb, (1, fan_out), jnp.float32, -bound, bound)
    return w, b


def init_cvae_params(key, X_dim, hidden_dim, latent_dim, num_cond, num_layers):
    keys = jax.random.split(key, 4 + 2 * (num_layers - 1) + 2)
    ki = iter(keys)
    params = {}
    params["enc_w0"], params["enc_b0"] = _linear_init(next(ki), X_dim + num_cond, hidden_dim)
    params["enc_hidden"] = [
        _linear_init(next(ki), hidden_dim, hidden_dim) for _ in range(num_layers - 1)
    ]
    params["w_mu"], params["b_mu"] = _linear_init(next(ki), hidden_dim, latent_dim)
    params["w_lv"], params["b_lv"] = _linear_init(next(ki), hidden_dim, latent_dim)
    params["dec_w0"], params["dec_b0"] = _linear_init(
        next(ki), latent_dim + num_cond, hidden_dim
    )
    params["dec_hidden"] = [
        _linear_init(next(ki), hidden_dim, hidden_dim) for _ in range(num_layers - 1)
    ]
    params["w_out"], params["b_out"] = _linear_init(next(ki), hidden_dim, X_dim)
    return params


# ----------------------------------------------------------------------------
# Wrapper
# ----------------------------------------------------------------------------
def cvae_forward(
    params, x, condition, eps, *,
    X_dim, hidden_dim, latent_dim, num_cond, num_layers,
    batch_tile=1024, weight_dtype=jnp.bfloat16,
):
    B = x.shape[0]
    f32 = jnp.float32

    # 128-lane-padded feature dims
    Hd = _round_up(hidden_dim, 128)
    Lp = _round_up(latent_dim, 128)
    Xp = _round_up(X_dim, 128)
    out_width = Xp + 2 * Lp

    TB = _choose_batch_tile(B, batch_tile)
    B_pad = _round_up(B, TB)
    grid = (B_pad // TB,)

    x_p = x.astype(f32)
    c_p = condition.astype(f32)
    eps_p = eps.astype(f32)
    if B_pad != B:
        x_p = jnp.pad(x_p, ((0, B_pad - B), (0, 0)))
        c_p = jnp.pad(c_p, ((0, B_pad - B), (0, 0)))
    if B_pad != B or Lp != latent_dim:
        eps_p = jnp.pad(eps_p, ((0, B_pad - B), (0, Lp - latent_dim)))

    # ---- weight packing: zero-pad to lane multiples, cast to bf16 (biases f32) ----
    wdt = weight_dtype
    enc_w0 = params["enc_w0"]
    w0x = _pad2(enc_w0[:X_dim], X_dim, Hd).astype(wdt)
    w0c = _pad2(enc_w0[X_dim:], num_cond, Hd).astype(wdt)
    b0 = _pad2(params["enc_b0"], 1, Hd)
    enc_hidden = [(_pad2(w, Hd, Hd).astype(wdt), _pad2(b, 1, Hd))
                  for w, b in params["enc_hidden"]]
    w_head = jnp.concatenate(
        [_pad2(params["w_mu"], Hd, Lp), _pad2(params["w_lv"], Hd, Lp)], axis=1
    ).astype(wdt)
    b_head = jnp.concatenate(
        [_pad2(params["b_mu"], 1, Lp), _pad2(params["b_lv"], 1, Lp)], axis=1
    )
    dec_w0 = params["dec_w0"]
    v0z = _pad2(dec_w0[:latent_dim], Lp, Hd).astype(wdt)
    v0c = _pad2(dec_w0[latent_dim:], num_cond, Hd).astype(wdt)
    c0 = _pad2(params["dec_b0"], 1, Hd)
    dec_hidden = [(_pad2(w, Hd, Hd).astype(wdt), _pad2(b, 1, Hd))
                  for w, b in params["dec_hidden"]]
    w_out = _pad2(params["w_out"], Hd, Xp).astype(wdt)
    b_out = _pad2(params["b_out"], 1, Xp)

    weight_inputs = [w0x, w0c, b0]
    for w, b in enc_hidden:
        weight_inputs += [w, b]
    weight_inputs += [w_head, b_head, v0z, v0c, c0]
    for w, b in dec_hidden:
        weight_inputs += [w, b]
    weight_inputs += [w_out, b_out]

    inputs = [x_p, c_p, eps_p] + weight_inputs

    def act_spec(feat):
        return pl.BlockSpec((TB, feat), lambda i: (i, 0))

    def weight_spec(arr, single_buffer):
        shape = tuple(arr.shape)
        if single_buffer:
            # constant index map -> one resident copy, no wasted double buffer
            return pl.BlockSpec(shape, lambda i: (0, 0), pipeline_mode=pl.Buffered(1))
        return pl.BlockSpec(shape, lambda i: (0, 0))

    out_shape = jax.ShapeDtypeStruct((B_pad, out_width), f32)
    out_specs = pl.BlockSpec((TB, out_width), lambda i: (i, 0))

    # cost estimate (lets XLA schedule surrounding ops around the kernel)
    flops_per_row = 2 * (
        (X_dim + num_cond) * Hd
        + 2 * (num_layers - 1) * Hd * Hd
        + Hd * 2 * Lp
        + (Lp + num_cond) * Hd
        + Hd * Xp
    )
    weight_bytes = sum(int(a.size) * a.dtype.itemsize for a in weight_inputs)
    io_bytes = (
        sum(int(a.size) * a.dtype.itemsize for a in (x_p, c_p, eps_p))
        + B_pad * out_width * 4
    )
    cost = pl.CostEstimate(
        flops=flops_per_row * B_pad,
        transcendentals=B_pad * Lp,
        bytes_accessed=weight_bytes + io_bytes,
    )

    # generation-aware VMEM budget (128 MiB on v5e/v6e, 64 MiB on v7x)
    try:
        vmem_cap = int(pltpu.get_tpu_info().vmem_capacity_bytes)
    except Exception:
        vmem_cap = 64 << 20
    vmem_budget = max(32 << 20, vmem_cap - (8 << 20))

    act_tile_bytes = TB * (x_p.shape[1] + c_p.shape[1] + Lp) * 4
    out_tile_bytes = TB * out_width * 4

    def build(single_buffer_weights):
        wbuf = 1 if single_buffer_weights else 2
        vmem_needed = (
            wbuf * weight_bytes + 2 * (act_tile_bytes + out_tile_bytes) + (4 << 20)
        )
        # TODO(synk): if vmem_needed ever exceeds vmem_budget (very large
        # hidden_dim/num_layers), stream hidden-layer weights from pl.ANY with
        # pltpu.emit_pipeline instead of keeping them VMEM-resident.
        vmem_limit = int(min(max(vmem_needed, 16 << 20), vmem_budget))
        in_specs = [act_spec(x_p.shape[1]), act_spec(c_p.shape[1]), act_spec(Lp)]
        in_specs += [weight_spec(a, single_buffer_weights) for a in weight_inputs]
        return pl.pallas_call(
            make_cvae_kernel(num_layers, Lp, Xp, wdt),
            out_shape=out_shape,
            grid=grid,
            in_specs=in_specs,
            out_specs=out_specs,
            compiler_params=pltpu.CompilerParams(
                dimension_semantics=("parallel",),
                vmem_limit_bytes=vmem_limit,
            ),
            cost_estimate=cost,
        )

    try:
        out = build(True)(*inputs)
    except Exception:
        # pipeline_mode=pl.Buffered(1) unsupported on this jax version;
        # fall back to default (double-buffered) weight specs.
        out = build(False)(*inputs)

    recon = out[:B, :X_dim]
    mu = out[:B, Xp:Xp + latent_dim]
    logvar = out[:B, Xp + Lp:Xp + Lp + latent_dim]
    return recon, mu, logvar


# ----------------------------------------------------------------------------
# Pure-JAX reference (f32 end-to-end, for sanity check)
# ----------------------------------------------------------------------------
def cvae_reference(params, x, condition, eps):
    xc = jnp.concatenate([x, condition], axis=1)
    h = jnp.maximum(xc @ params["enc_w0"] + params["enc_b0"], 0.0)
    for w, b in params["enc_hidden"]:
        h = jnp.maximum(h @ w + b, 0.0)
    mu = h @ params["w_mu"] + params["b_mu"]
    logvar = h @ params["w_lv"] + params["b_lv"]
    latent = eps * jnp.exp(0.5 * logvar) + mu
    z = jnp.concatenate([latent, condition], axis=1)
    g = jnp.maximum(z @ params["dec_w0"] + params["dec_b0"], 0.0)
    for w, b in params["dec_hidden"]:
        g = jnp.maximum(g @ w + b, 0.0)
    recon = g @ params["w_out"] + params["b_out"]
    return recon, mu, logvar


# ----------------------------------------------------------------------------
if __name__ == "__main__":
    # small config consistent with the module's constructor
    config = dict(
        input_dim=16, hidden_dim=32, latent_dim=8, condition_dim=4, num_layers=2
    )
    batch = 24          # 3 grid steps with batch_tile=8 (exercises the pipeline)

    key = jax.random.PRNGKey(0)
    k_params, k_x, k_c, k_eps = jax.random.split(key, 4)

    params = init_cvae_params(
        k_params,
        X_dim=config["input_dim"],
        hidden_dim=config["hidden_dim"],
        latent_dim=config["latent_dim"],
        num_cond=config["condition_dim"],
        num_layers=config["num_layers"],
    )

    x = jax.random.normal(k_x, (batch, config["input_dim"]), jnp.float32)
    condition = jax.random.normal(k_c, (batch, config["condition_dim"]), jnp.float32)
    # eps ~ N(0,1): PyTorch draws this internally with torch RNG; here we draw it
    # with JAX RNG and feed it in (same distribution, deterministic in-script).
    eps = jax.random.normal(k_eps, (batch, config["latent_dim"]), jnp.float32)

    recon, mu, logvar = cvae_forward(
        params, x, condition, eps,
        X_dim=config["input_dim"],
        hidden_dim=config["hidden_dim"],
        latent_dim=config["latent_dim"],
        num_cond=config["condition_dim"],
        num_layers=config["num_layers"],
        batch_tile=8,
    )
    jax.block_until_ready((recon, mu, logvar))

    # sanity check against a plain-JAX f32 reference (kernel uses bf16 weights)
    r_ref, mu_ref, lv_ref = cvae_reference(params, x, condition, eps)
    assert recon.shape == r_ref.shape and mu.shape == mu_ref.shape
    assert jnp.allclose(recon, r_ref, rtol=2e-2, atol=2e-2)
    assert jnp.allclose(mu, mu_ref, rtol=2e-2, atol=2e-2)
    assert jnp.allclose(logvar, lv_ref, rtol=2e-2, atol=2e-2)

    print("KERNEL_OK")
</pallas_src>

<mosaic_0001>
module attributes {stable_mosaic.version = 11 : i64} {
  func.func @kernel(%arg0: i32, %arg1: memref<8x16xf32, #tpu.memory_space<vmem>>, %arg2: memref<8x4xf32, #tpu.memory_space<vmem>>, %arg3: memref<8x128xf32, #tpu.memory_space<vmem>>, %arg4: memref<16x128xbf16, #tpu.memory_space<vmem>>, %arg5: memref<4x128xbf16, #tpu.memory_space<vmem>>, %arg6: memref<1x128xf32, #tpu.memory_space<vmem>>, %arg7: memref<128x128xbf16, #tpu.memory_space<vmem>>, %arg8: memref<1x128xf32, #tpu.memory_space<vmem>>, %arg9: memref<128x256xbf16, #tpu.memory_space<vmem>>, %arg10: memref<1x256xf32, #tpu.memory_space<vmem>>, %arg11: memref<128x128xbf16, #tpu.memory_space<vmem>>, %arg12: memref<4x128xbf16, #tpu.memory_space<vmem>>, %arg13: memref<1x128xf32, #tpu.memory_space<vmem>>, %arg14: memref<128x128xbf16, #tpu.memory_space<vmem>>, %arg15: memref<1x128xf32, #tpu.memory_space<vmem>>, %arg16: memref<128x128xbf16, #tpu.memory_space<vmem>>, %arg17: memref<1x128xf32, #tpu.memory_space<vmem>>, %arg18: memref<8x384xf32, #tpu.memory_space<vmem>>) attributes {dimension_semantics = [#tpu.dimension_semantics<parallel>], iteration_bounds = array<i64: 3>, scalar_prefetch = 0 : i64, scratch_operands = 0 : i64, tpu.core_type = #tpu.core_type<tc>, window_params = [{transform_indices = @transform_0, window_bounds = array<i64: 8, 16>}, {transform_indices = @transform_1, window_bounds = array<i64: 8, 4>}, {transform_indices = @transform_2, window_bounds = array<i64: 8, 128>}, {pipeline_mode = #tpu.pipeline_mode<synchronous>, transform_indices = @transform_3, window_bounds = array<i64: 16, 128>}, {pipeline_mode = #tpu.pipeline_mode<synchronous>, transform_indices = @transform_4, window_bounds = array<i64: 4, 128>}, {pipeline_mode = #tpu.pipeline_mode<synchronous>, transform_indices = @transform_5, window_bounds = array<i64: 1, 128>}, {pipeline_mode = #tpu.pipeline_mode<synchronous>, transform_indices = @transform_6, window_bounds = array<i64: 128, 128>}, {pipeline_mode = #tpu.pipeline_mode<synchronous>, transform_indices = @transform_7, window_bounds = array<i64: 1, 128>}, {pipeline_mode = #tpu.pipeline_mode<synchronous>, transform_indices = @transform_8, window_bounds = array<i64: 128, 256>}, {pipeline_mode = #tpu.pipeline_mode<synchronous>, transform_indices = @transform_9, window_bounds = array<i64: 1, 256>}, {pipeline_mode = #tpu.pipeline_mode<synchronous>, transform_indices = @transform_10, window_bounds = array<i64: 128, 128>}, {pipeline_mode = #tpu.pipeline_mode<synchronous>, transform_indices = @transform_11, window_bounds = array<i64: 4, 128>}, {pipeline_mode = #tpu.pipeline_mode<synchronous>, transform_indices = @transform_12, window_bounds = array<i64: 1, 128>}, {pipeline_mode = #tpu.pipeline_mode<synchronous>, transform_indices = @transform_13, window_bounds = array<i64: 128, 128>}, {pipeline_mode = #tpu.pipeline_mode<synchronous>, transform_indices = @transform_14, window_bounds = array<i64: 1, 128>}, {pipeline_mode = #tpu.pipeline_mode<synchronous>, transform_indices = @transform_15, window_bounds = array<i64: 128, 128>}, {pipeline_mode = #tpu.pipeline_mode<synchronous>, transform_indices = @transform_16, window_bounds = array<i64: 1, 128>}, {transform_indices = @transform_17, window_bounds = array<i64: 8, 384>}]} {
    %c0 = arith.constant 0 : index
    %c0_0 = arith.constant 0 : index
    %0 = vector.load %arg1[%c0, %c0_0] : memref<8x16xf32, #tpu.memory_space<vmem>>, vector<8x16xf32>
    %1 = arith.truncf %0 : vector<8x16xf32> to vector<8x16xbf16>
    %c0_1 = arith.constant 0 : index
    %c0_2 = arith.constant 0 : index
    %2 = vector.load %arg2[%c0_1, %c0_2] : memref<8x4xf32, #tpu.memory_space<vmem>>, vector<8x4xf32>
    %3 = arith.truncf %2 : vector<8x4xf32> to vector<8x4xbf16>
    %c0_3 = arith.constant 0 : index
    %c0_4 = arith.constant 0 : index
    %4 = vector.load %arg3[%c0_3, %c0_4] : memref<8x128xf32, #tpu.memory_space<vmem>>, vector<8x128xf32>
    %c0_5 = arith.constant 0 : index
    %c0_6 = arith.constant 0 : index
    %5 = vector.load %arg4[%c0_5, %c0_6] : memref<16x128xbf16, #tpu.memory_space<vmem>>, vector<16x128xbf16>
    %cst = arith.constant dense<0.000000e+00> : vector<8x128xf32>
    %6 = tpu.matmul %1, %5, %cst {dimension_numbers = #tpu.dot_dimension_numbers<[1], [0], [0], [1], [0, 0, 1, 1], [], []>} : vector<8x16xbf16>, vector<16x128xbf16>, vector<8x128xf32> -> vector<8x128xf32>
    %c0_7 = arith.constant 0 : index
    %c0_8 = arith.constant 0 : index
    %7 = vector.load %arg5[%c0_7, %c0_8] : memref<4x128xbf16, #tpu.memory_space<vmem>>, vector<4x128xbf16>
    %cst_9 = arith.constant dense<0.000000e+00> : vector<8x128xf32>
    %8 = tpu.matmul %3, %7, %cst_9 {dimension_numbers = #tpu.dot_dimension_numbers<[1], [0], [0], [1], [0, 0, 1, 1], [], []>} : vector<8x4xbf16>, vector<4x128xbf16>, vector<8x128xf32> -> vector<8x128xf32>
    %9 = arith.addf %6, %8 : vector<8x128xf32>
    %c0_10 = arith.constant 0 : index
    %c0_11 = arith.constant 0 : index
    %10 = vector.load %arg6[%c0_10, %c0_11] : memref<1x128xf32, #tpu.memory_space<vmem>>, vector<1x128xf32>
    %11 = vector.broadcast %10 : vector<1x128xf32> to vector<8x128xf32>
    %12 = arith.addf %9, %11 : vector<8x128xf32>
    %cst_12 = arith.constant 0.000000e+00 : f32
    %13 = vector.broadcast %cst_12 : f32 to vector<8x128xf32>
    %14 = arith.maximumf %12, %13 : vector<8x128xf32>
    %15 = arith.truncf %14 : vector<8x128xf32> to vector<8x128xbf16>
    %c0_13 = arith.constant 0 : index
    %c0_14 = arith.constant 0 : index
    %16 = vector.load %arg7[%c0_13, %c0_14] : memref<128x128xbf16, #tpu.memory_space<vmem>>, vector<128x128xbf16>
    %cst_15 = arith.constant dense<0.000000e+00> : vector<8x128xf32>
    %17 = tpu.matmul %15, %16, %cst_15 {dimension_numbers = #tpu.dot_dimension_numbers<[1], [0], [0], [1], [0, 0, 1, 1], [], []>} : vector<8x128xbf16>, vector<128x128xbf16>, vector<8x128xf32> -> vector<8x128xf32>
    %c0_16 = arith.constant 0 : index
    %c0_17 = arith.constant 0 : index
    %18 = vector.load %arg8[%c0_16, %c0_17] : memref<1x128xf32, #tpu.memory_space<vmem>>, vector<1x128xf32>
    %19 = vector.broadcast %18 : vector<1x128xf32> to vector<8x128xf32>
    %20 = arith.addf %17, %19 : vector<8x128xf32>
    %cst_18 = arith.constant 0.000000e+00 : f32
    %21 = vector.broadcast %cst_18 : f32 to vector<8x128xf32>
    %22 = arith.maximumf %20, %21 : vector<8x128xf32>
    %23 = arith.truncf %22 : vector<8x128xf32> to vector<8x128xbf16>
    %c0_19 = arith.constant 0 : index
    %c0_20 = arith.constant 0 : index
    %24 = vector.load %arg9[%c0_19, %c0_20] : memref<128x256xbf16, #tpu.memory_space<vmem>>, vector<128x256xbf16>
    %cst_21 = arith.constant dense<0.000000e+00> : vector<8x256xf32>
    %25 = tpu.matmul %23, %24, %cst_21 {dimension_numbers = #tpu.dot_dimension_numbers<[1], [0], [0], [1], [0, 0, 1, 1], [], []>} : vector<8x128xbf16>, vector<128x256xbf16>, vector<8x256xf32> -> vector<8x256xf32>
    %c0_22 = arith.constant 0 : index
    %c0_23 = arith.constant 0 : index
    %26 = vector.load %arg10[%c0_22, %c0_23] : memref<1x256xf32, #tpu.memory_space<vmem>>, vector<1x256xf32>
    %27 = vector.broadcast %26 : vector<1x256xf32> to vector<8x256xf32>
    %28 = arith.addf %25, %27 : vector<8x256xf32>
    %29 = vector.extract_strided_slice %28 {offsets = [0, 0], sizes = [8, 128], strides = [1, 1]} : vector<8x256xf32> to vector<8x128xf32>
    %30 = vector.extract_strided_slice %28 {offsets = [0, 128], sizes = [8, 128], strides = [1, 1]} : vector<8x256xf32> to vector<8x128xf32>
    %cst_24 = arith.constant 5.000000e-01 : f32
    %31 = vector.broadcast %cst_24 : f32 to vector<8x128xf32>
    %32 = arith.mulf %31, %30 : vector<8x128xf32>
    %33 = math.exp %32 : vector<8x128xf32>
    %34 = arith.mulf %4, %33 : vector<8x128xf32>
    %35 = arith.addf %34, %29 : vector<8x128xf32>
    %36 = arith.truncf %35 : vector<8x128xf32> to vector<8x128xbf16>
    %c0_25 = arith.constant 0 : index
    %c0_26 = arith.constant 0 : index
    %37 = vector.load %arg11[%c0_25, %c0_26] : memref<128x128xbf16, #tpu.memory_space<vmem>>, vector<128x128xbf16>
    %cst_27 = arith.constant dense<0.000000e+00> : vector<8x128xf32>
    %38 = tpu.matmul %36, %37, %cst_27 {dimension_numbers = #tpu.dot_dimension_numbers<[1], [0], [0], [1], [0, 0, 1, 1], [], []>} : vector<8x128xbf16>, vector<128x128xbf16>, vector<8x128xf32> -> vector<8x128xf32>
    %c0_28 = arith.constant 0 : index
    %c0_29 = arith.constant 0 : index
    %39 = vector.load %arg12[%c0_28, %c0_29] : memref<4x128xbf16, #tpu.memory_space<vmem>>, vector<4x128xbf16>
    %cst_30 = arith.constant dense<0.000000e+00> : vector<8x128xf32>
    %40 = tpu.matmul %3, %39, %cst_30 {dimension_numbers = #tpu.dot_dimension_numbers<[1], [0], [0], [1], [0, 0, 1, 1], [], []>} : vector<8x4xbf16>, vector<4x128xbf16>, vector<8x128xf32> -> vector<8x128xf32>
    %41 = arith.addf %38, %40 : vector<8x128xf32>
    %c0_31 = arith.constant 0 : index
    %c0_32 = arith.constant 0 : index
    %42 = vector.load %arg13[%c0_31, %c0_32] : memref<1x128xf32, #tpu.memory_space<vmem>>, vector<1x128xf32>
    %43 = vector.broadcast %42 : vector<1x128xf32> to vector<8x128xf32>
    %44 = arith.addf %41, %43 : vector<8x128xf32>
    %cst_33 = arith.constant 0.000000e+00 : f32
    %45 = vector.broadcast %cst_33 : f32 to vector<8x128xf32>
    %46 = arith.maximumf %44, %45 : vector<8x128xf32>
    %47 = arith.truncf %46 : vector<8x128xf32> to vector<8x128xbf16>
    %c0_34 = arith.constant 0 : index
    %c0_35 = arith.constant 0 : index
    %48 = vector.load %arg14[%c0_34, %c0_35] : memref<128x128xbf16, #tpu.memory_space<vmem>>, vector<128x128xbf16>
    %cst_36 = arith.constant dense<0.000000e+00> : vector<8x128xf32>
    %49 = tpu.matmul %47, %48, %cst_36 {dimension_numbers = #tpu.dot_dimension_numbers<[1], [0], [0], [1], [0, 0, 1, 1], [], []>} : vector<8x128xbf16>, vector<128x128xbf16>, vector<8x128xf32> -> vector<8x128xf32>
    %c0_37 = arith.constant 0 : index
    %c0_38 = arith.constant 0 : index
    %50 = vector.load %arg15[%c0_37, %c0_38] : memref<1x128xf32, #tpu.memory_space<vmem>>, vector<1x128xf32>
    %51 = vector.broadcast %50 : vector<1x128xf32> to vector<8x128xf32>
    %52 = arith.addf %49, %51 : vector<8x128xf32>
    %cst_39 = arith.constant 0.000000e+00 : f32
    %53 = vector.broadcast %cst_39 : f32 to vector<8x128xf32>
    %54 = arith.maximumf %52, %53 : vector<8x128xf32>
    %55 = arith.truncf %54 : vector<8x128xf32> to vector<8x128xbf16>
    %c0_40 = arith.constant 0 : index
    %c0_41 = arith.constant 0 : index
    %56 = vector.load %arg16[%c0_40, %c0_41] : memref<128x128xbf16, #tpu.memory_space<vmem>>, vector<128x128xbf16>
    %cst_42 = arith.constant dense<0.000000e+00> : vector<8x128xf32>
    %57 = tpu.matmul %55, %56, %cst_42 {dimension_numbers = #tpu.dot_dimension_numbers<[1], [0], [0], [1], [0, 0, 1, 1], [], []>} : vector<8x128xbf16>, vector<128x128xbf16>, vector<8x128xf32> -> vector<8x128xf32>
    %c0_43 = arith.constant 0 : index
    %c0_44 = arith.constant 0 : index
    %58 = vector.load %arg17[%c0_43, %c0_44] : memref<1x128xf32, #tpu.memory_space<vmem>>, vector<1x128xf32>
    %59 = vector.broadcast %58 : vector<1x128xf32> to vector<8x128xf32>
    %60 = arith.addf %57, %59 : vector<8x128xf32>
    %c0_45 = arith.constant 0 : index
    %c0_46 = arith.constant 0 : index
    %61 = vector.load %arg18[%c0_45, %c0_46] : memref<8x384xf32, #tpu.memory_space<vmem>>, vector<8x128xf32>
    tpu.vector_store %arg18[%c0_45, %c0_46], %60 {strides = array<i32>} : memref<8x384xf32, #tpu.memory_space<vmem>>, vector<8x128xf32>,
    %c0_47 = arith.constant 0 : index
    %c128 = arith.constant 128 : index
    %62 = vector.load %arg18[%c0_47, %c128] : memref<8x384xf32, #tpu.memory_space<vmem>>, vector<8x256xf32>
    tpu.vector_store %arg18[%c0_47, %c128], %28 {strides = array<i32>} : memref<8x384xf32, #tpu.memory_space<vmem>>, vector<8x256xf32>,
    return
  }
  func.func @transform_0(%arg0: i32) -> (i32, i32) {
    %c0_i32 = arith.constant 0 : i32
    %c0_i32_0 = arith.constant 0 : i32
    return %arg0, %c0_i32 : i32, i32
  }
  func.func @transform_1(%arg0: i32) -> (i32, i32) {
    %c0_i32 = arith.constant 0 : i32
    %c0_i32_0 = arith.constant 0 : i32
    return %arg0, %c0_i32 : i32, i32
  }
  func.func @transform_2(%arg0: i32) -> (i32, i32) {
    %c0_i32 = arith.constant 0 : i32
    %c0_i32_0 = arith.constant 0 : i32
    return %arg0, %c0_i32 : i32, i32
  }
  func.func @transform_3(%arg0: i32) -> (i32, i32) {
    %c0_i32 = arith.constant 0 : i32
    %c0_i32_0 = arith.constant 0 : i32
    %c0_i32_1 = arith.constant 0 : i32
    return %c0_i32, %c0_i32_0 : i32, i32
  }
  func.func @transform_4(%arg0: i32) -> (i32, i32) {
    %c0_i32 = arith.constant 0 : i32
    %c0_i32_0 = arith.constant 0 : i32
    %c0_i32_1 = arith.constant 0 : i32
    return %c0_i32, %c0_i32_0 : i32, i32
  }
  func.func @transform_5(%arg0: i32) -> (i32, i32) {
    %c0_i32 = arith.constant 0 : i32
    %c0_i32_0 = arith.constant 0 : i32
    %c0_i32_1 = arith.constant 0 : i32
    return %c0_i32, %c0_i32_0 : i32, i32
  }
  func.func @transform_6(%arg0: i32) -> (i32, i32) {
    %c0_i32 = arith.constant 0 : i32
    %c0_i32_0 = arith.constant 0 : i32
    %c0_i32_1 = arith.constant 0 : i32
    return %c0_i32, %c0_i32_0 : i32, i32
  }
  func.func @transform_7(%arg0: i32) -> (i32, i32) {
    %c0_i32 = arith.constant 0 : i32
    %c0_i32_0 = arith.constant 0 : i32
    %c0_i32_1 = arith.constant 0 : i32
    return %c0_i32, %c0_i32_0 : i32, i32
  }
  func.func @transform_8(%arg0: i32) -> (i32, i32) {
    %c0_i32 = arith.constant 0 : i32
    %c0_i32_0 = arith.constant 0 : i32
    %c0_i32_1 = arith.constant 0 : i32
    return %c0_i32, %c0_i32_0 : i32, i32
  }
  func.func @transform_9(%arg0: i32) -> (i32, i32) {
    %c0_i32 = arith.constant 0 : i32
    %c0_i32_0 = arith.constant 0 : i32
    %c0_i32_1 = arith.constant 0 : i32
    return %c0_i32, %c0_i32_0 : i32, i32
  }
  func.func @transform_10(%arg0: i32) -> (i32, i32) {
    %c0_i32 = arith.constant 0 : i32
    %c0_i32_0 = arith.constant 0 : i32
    %c0_i32_1 = arith.constant 0 : i32
    return %c0_i32, %c0_i32_0 : i32, i32
  }
  func.func @transform_11(%arg0: i32) -> (i32, i32) {
    %c0_i32 = arith.constant 0 : i32
    %c0_i32_0 = arith.constant 0 : i32
    %c0_i32_1 = arith.constant 0 : i32
    return %c0_i32, %c0_i32_0 : i32, i32
  }
  func.func @transform_12(%arg0: i32) -> (i32, i32) {
    %c0_i32 = arith.constant 0 : i32
    %c0_i32_0 = arith.constant 0 : i32
    %c0_i32_1 = arith.constant 0 : i32
    return %c0_i32, %c0_i32_0 : i32, i32
  }
  func.func @transform_13(%arg0: i32) -> (i32, i32) {
    %c0_i32 = arith.constant 0 : i32
    %c0_i32_0 = arith.constant 0 : i32
    %c0_i32_1 = arith.constant 0 : i32
    return %c0_i32, %c0_i32_0 : i32, i32
  }
  func.func @transform_14(%arg0: i32) -> (i32, i32) {
    %c0_i32 = arith.constant 0 : i32
    %c0_i32_0 = arith.constant 0 : i32
    %c0_i32_1 = arith.constant 0 : i32
    return %c0_i32, %c0_i32_0 : i32, i32
  }
  func.func @transform_15(%arg0: i32) -> (i32, i32) {
    %c0_i32 = arith.constant 0 : i32
    %c0_i32_0 = arith.constant 0 : i32
    %c0_i32_1 = arith.constant 0 : i32
    return %c0_i32, %c0_i32_0 : i32, i32
  }
  func.func @transform_16(%arg0: i32) -> (i32, i32) {
    %c0_i32 = arith.constant 0 : i32
    %c0_i32_0 = arith.constant 0 : i32
    %c0_i32_1 = arith.constant 0 : i32
    return %c0_i32, %c0_i32_0 : i32, i32
  }
  func.func @transform_17(%arg0: i32) -> (i32, i32) {
    %c0_i32 = arith.constant 0 : i32
    %c0_i32_0 = arith.constant 0 : i32
    return %arg0, %c0_i32 : i32, i32
  }
}

module attributes {stable_mosaic.version = 11 : i64} {
  func.func @kernel(%arg0: i32, %arg1: memref<8x16xf32, #tpu.memory_space<vmem>>, %arg2: memref<8x4xf32, #tpu.memory_space<vmem>>, %arg3: memref<8x128xf32, #tpu.memory_space<vmem>>, %arg4: memref<16x128xbf16, #tpu.memory_space<vmem>>, %arg5: memref<4x128xbf16, #tpu.memory_space<vmem>>, %arg6: memref<1x128xf32, #tpu.memory_space<vmem>>, %arg7: memref<128x128xbf16, #tpu.memory_space<vmem>>, %arg8: memref<1x128xf32, #tpu.memory_space<vmem>>, %arg9: memref<128x256xbf16, #tpu.memory_space<vmem>>, %arg10: memref<1x256xf32, #tpu.memory_space<vmem>>, %arg11: memref<128x128xbf16, #tpu.memory_space<vmem>>, %arg12: memref<4x128xbf16, #tpu.memory_space<vmem>>, %arg13: memref<1x128xf32, #tpu.memory_space<vmem>>, %arg14: memref<128x128xbf16, #tpu.memory_space<vmem>>, %arg15: memref<1x128xf32, #tpu.memory_space<vmem>>, %arg16: memref<128x128xbf16, #tpu.memory_space<vmem>>, %arg17: memref<1x128xf32, #tpu.memory_space<vmem>>, %arg18: memref<8x384xf32, #tpu.memory_space<vmem>>) attributes {dimension_semantics = [#tpu.dimension_semantics<parallel>], iteration_bounds = array<i64: 3>, scalar_prefetch = 0 : i64, scratch_operands = 0 : i64, tpu.core_type = #tpu.core_type<tc>, window_params = [{transform_indices = @transform_0, window_bounds = array<i64: 8, 16>}, {transform_indices = @transform_1, window_bounds = array<i64: 8, 4>}, {transform_indices = @transform_2, window_bounds = array<i64: 8, 128>}, {pipeline_mode = #tpu.pipeline_mode<synchronous>, transform_indices = @transform_3, window_bounds = array<i64: 16, 128>}, {pipeline_mode = #tpu.pipeline_mode<synchronous>, transform_indices = @transform_4, window_bounds = array<i64: 4, 128>}, {pipeline_mode = #tpu.pipeline_mode<synchronous>, transform_indices = @transform_5, window_bounds = array<i64: 1, 128>}, {pipeline_mode = #tpu.pipeline_mode<synchronous>, transform_indices = @transform_6, window_bounds = array<i64: 128, 128>}, {pipeline_mode = #tpu.pipeline_mode<synchronous>, transform_indices = @transform_7, window_bounds = array<i64: 1, 128>}, {pipeline_mode = #tpu.pipeline_mode<synchronous>, transform_indices = @transform_8, window_bounds = array<i64: 128, 256>}, {pipeline_mode = #tpu.pipeline_mode<synchronous>, transform_indices = @transform_9, window_bounds = array<i64: 1, 256>}, {pipeline_mode = #tpu.pipeline_mode<synchronous>, transform_indices = @transform_10, window_bounds = array<i64: 128, 128>}, {pipeline_mode = #tpu.pipeline_mode<synchronous>, transform_indices = @transform_11, window_bounds = array<i64: 4, 128>}, {pipeline_mode = #tpu.pipeline_mode<synchronous>, transform_indices = @transform_12, window_bounds = array<i64: 1, 128>}, {pipeline_mode = #tpu.pipeline_mode<synchronous>, transform_indices = @transform_13, window_bounds = array<i64: 128, 128>}, {pipeline_mode = #tpu.pipeline_mode<synchronous>, transform_indices = @transform_14, window_bounds = array<i64: 1, 128>}, {pipeline_mode = #tpu.pipeline_mode<synchronous>, transform_indices = @transform_15, window_bounds = array<i64: 128, 128>}, {pipeline_mode = #tpu.pipeline_mode<synchronous>, transform_indices = @transform_16, window_bounds = array<i64: 1, 128>}, {transform_indices = @transform_17, window_bounds = array<i64: 8, 384>}]} {
    %c0 = arith.constant 0 : index
    %c0_0 = arith.constant 0 : index
    %0 = vector.load %arg1[%c0, %c0_0] : memref<8x16xf32, #tpu.memory_space<vmem>>, vector<8x16xf32>
    %1 = arith.truncf %0 : vector<8x16xf32> to vector<8x16xbf16>
    %c0_1 = arith.constant 0 : index
    %c0_2 = arith.constant 0 : index
    %2 = vector.load %arg2[%c0_1, %c0_2] : memref<8x4xf32, #tpu.memory_space<vmem>>, vector<8x4xf32>
    %3 = arith.truncf %2 : vector<8x4xf32> to vector<8x4xbf16>
    %c0_3 = arith.constant 0 : index
    %c0_4 = arith.constant 0 : index
    %4 = vector.load %arg3[%c0_3, %c0_4] : memref<8x128xf32, #tpu.memory_space<vmem>>, vector<8x128xf32>
    %c0_5 = arith.constant 0 : index
    %c0_6 = arith.constant 0 : index
    %5 = vector.load %arg4[%c0_5, %c0_6] : memref<16x128xbf16, #tpu.memory_space<vmem>>, vector<16x128xbf16>
    %cst = arith.constant dense<0.000000e+00> : vector<8x128xf32>
    %6 = tpu.matmul %1, %5, %cst {dimension_numbers = #tpu.dot_dimension_numbers<[1], [0], [0], [1], [0, 0, 1, 1], [], []>} : vector<8x16xbf16>, vector<16x128xbf16>, vector<8x128xf32> -> vector<8x128xf32>
    %c0_7 = arith.constant 0 : index
    %c0_8 = arith.constant 0 : index
    %7 = vector.load %arg5[%c0_7, %c0_8] : memref<4x128xbf16, #tpu.memory_space<vmem>>, vector<4x128xbf16>
    %cst_9 = arith.constant dense<0.000000e+00> : vector<8x128xf32>
    %8 = tpu.matmul %3, %7, %cst_9 {dimension_numbers = #tpu.dot_dimension_numbers<[1], [0], [0], [1], [0, 0, 1, 1], [], []>} : vector<8x4xbf16>, vector<4x128xbf16>, vector<8x128xf32> -> vector<8x128xf32>
    %9 = arith.addf %6, %8 : vector<8x128xf32>
    %c0_10 = arith.constant 0 : index
    %c0_11 = arith.constant 0 : index
    %10 = vector.load %arg6[%c0_10, %c0_11] : memref<1x128xf32, #tpu.memory_space<vmem>>, vector<1x128xf32>
    %11 = vector.broadcast %10 : vector<1x128xf32> to vector<8x128xf32>
    %12 = arith.addf %9, %11 : vector<8x128xf32>
    %cst_12 = arith.constant 0.000000e+00 : f32
    %13 = vector.broadcast %cst_12 : f32 to vector<8x128xf32>
    %14 = arith.maximumf %12, %13 : vector<8x128xf32>
    %15 = arith.truncf %14 : vector<8x128xf32> to vector<8x128xbf16>
    %c0_13 = arith.constant 0 : index
    %c0_14 = arith.constant 0 : index
    %16 = vector.load %arg7[%c0_13, %c0_14] : memref<128x128xbf16, #tpu.memory_space<vmem>>, vector<128x128xbf16>
    %cst_15 = arith.constant dense<0.000000e+00> : vector<8x128xf32>
    %17 = tpu.matmul %15, %16, %cst_15 {dimension_numbers = #tpu.dot_dimension_numbers<[1], [0], [0], [1], [0, 0, 1, 1], [], []>} : vector<8x128xbf16>, vector<128x128xbf16>, vector<8x128xf32> -> vector<8x128xf32>
    %c0_16 = arith.constant 0 : index
    %c0_17 = arith.constant 0 : index
    %18 = vector.load %arg8[%c0_16, %c0_17] : memref<1x128xf32, #tpu.memory_space<vmem>>, vector<1x128xf32>
    %19 = vector.broadcast %18 : vector<1x128xf32> to vector<8x128xf32>
    %20 = arith.addf %17, %19 : vector<8x128xf32>
    %cst_18 = arith.constant 0.000000e+00 : f32
    %21 = vector.broadcast %cst_18 : f32 to vector<8x128xf32>
    %22 = arith.maximumf %20, %21 : vector<8x128xf32>
    %23 = arith.truncf %22 : vector<8x128xf32> to vector<8x128xbf16>
    %c0_19 = arith.constant 0 : index
    %c0_20 = arith.constant 0 : index
    %24 = vector.load %arg9[%c0_19, %c0_20] : memref<128x256xbf16, #tpu.memory_space<vmem>>, vector<128x256xbf16>
    %cst_21 = arith.constant dense<0.000000e+00> : vector<8x256xf32>
    %25 = tpu.matmul %23, %24, %cst_21 {dimension_numbers = #tpu.dot_dimension_numbers<[1], [0], [0], [1], [0, 0, 1, 1], [], []>} : vector<8x128xbf16>, vector<128x256xbf16>, vector<8x256xf32> -> vector<8x256xf32>
    %c0_22 = arith.constant 0 : index
    %c0_23 = arith.constant 0 : index
    %26 = vector.load %arg10[%c0_22, %c0_23] : memref<1x256xf32, #tpu.memory_space<vmem>>, vector<1x256xf32>
    %27 = vector.broadcast %26 : vector<1x256xf32> to vector<8x256xf32>
    %28 = arith.addf %25, %27 : vector<8x256xf32>
    %29 = vector.extract_strided_slice %28 {offsets = [0, 0], sizes = [8, 128], strides = [1, 1]} : vector<8x256xf32> to vector<8x128xf32>
    %30 = vector.extract_strided_slice %28 {offsets = [0, 128], sizes = [8, 128], strides = [1, 1]} : vector<8x256xf32> to vector<8x128xf32>
    %cst_24 = arith.constant 5.000000e-01 : f32
    %31 = vector.broadcast %cst_24 : f32 to vector<8x128xf32>
    %32 = arith.mulf %31, %30 : vector<8x128xf32>
    %33 = math.exp %32 : vector<8x128xf32>
    %34 = arith.mulf %4, %33 : vector<8x128xf32>
    %35 = arith.addf %34, %29 : vector<8x128xf32>
    %36 = arith.truncf %35 : vector<8x128xf32> to vector<8x128xbf16>
    %c0_25 = arith.constant 0 : index
    %c0_26 = arith.constant 0 : index
    %37 = vector.load %arg11[%c0_25, %c0_26] : memref<128x128xbf16, #tpu.memory_space<vmem>>, vector<128x128xbf16>
    %cst_27 = arith.constant dense<0.000000e+00> : vector<8x128xf32>
    %38 = tpu.matmul %36, %37, %cst_27 {dimension_numbers = #tpu.dot_dimension_numbers<[1], [0], [0], [1], [0, 0, 1, 1], [], []>} : vector<8x128xbf16>, vector<128x128xbf16>, vector<8x128xf32> -> vector<8x128xf32>
    %c0_28 = arith.constant 0 : index
    %c0_29 = arith.constant 0 : index
    %39 = vector.load %arg12[%c0_28, %c0_29] : memref<4x128xbf16, #tpu.memory_space<vmem>>, vector<4x128xbf16>
    %cst_30 = arith.constant dense<0.000000e+00> : vector<8x128xf32>
    %40 = tpu.matmul %3, %39, %cst_30 {dimension_numbers = #tpu.dot_dimension_numbers<[1], [0], [0], [1], [0, 0, 1, 1], [], []>} : vector<8x4xbf16>, vector<4x128xbf16>, vector<8x128xf32> -> vector<8x128xf32>
    %41 = arith.addf %38, %40 : vector<8x128xf32>
    %c0_31 = arith.constant 0 : index
    %c0_32 = arith.constant 0 : index
    %42 = vector.load %arg13[%c0_31, %c0_32] : memref<1x128xf32, #tpu.memory_space<vmem>>, vector<1x128xf32>
    %43 = vector.broadcast %42 : vector<1x128xf32> to vector<8x128xf32>
    %44 = arith.addf %41, %43 : vector<8x128xf32>
    %cst_33 = arith.constant 0.000000e+00 : f32
    %45 = vector.broadcast %cst_33 : f32 to vector<8x128xf32>
    %46 = arith.maximumf %44, %45 : vector<8x128xf32>
    %47 = arith.truncf %46 : vector<8x128xf32> to vector<8x128xbf16>
    %c0_34 = arith.constant 0 : index
    %c0_35 = arith.constant 0 : index
    %48 = vector.load %arg14[%c0_34, %c0_35] : memref<128x128xbf16, #tpu.memory_space<vmem>>, vector<128x128xbf16>
    %cst_36 = arith.constant dense<0.000000e+00> : vector<8x128xf32>
    %49 = tpu.matmul %47, %48, %cst_36 {dimension_numbers = #tpu.dot_dimension_numbers<[1], [0], [0], [1], [0, 0, 1, 1], [], []>} : vector<8x128xbf16>, vector<128x128xbf16>, vector<8x128xf32> -> vector<8x128xf32>
    %c0_37 = arith.constant 0 : index
    %c0_38 = arith.constant 0 : index
    %50 = vector.load %arg15[%c0_37, %c0_38] : memref<1x128xf32, #tpu.memory_space<vmem>>, vector<1x128xf32>
    %51 = vector.broadcast %50 : vector<1x128xf32> to vector<8x128xf32>
    %52 = arith.addf %49, %51 : vector<8x128xf32>
    %cst_39 = arith.constant 0.000000e+00 : f32
    %53 = vector.broadcast %cst_39 : f32 to vector<8x128xf32>
    %54 = arith.maximumf %52, %53 : vector<8x128xf32>
    %55 = arith.truncf %54 : vector<8x128xf32> to vector<8x128xbf16>
    %c0_40 = arith.constant 0 : index
    %c0_41 = arith.constant 0 : index
    %56 = vector.load %arg16[%c0_40, %c0_41] : memref<128x128xbf16, #tpu.memory_space<vmem>>, vector<128x128xbf16>
    %cst_42 = arith.constant dense<0.000000e+00> : vector<8x128xf32>
    %57 = tpu.matmul %55, %56, %cst_42 {dimension_numbers = #tpu.dot_dimension_numbers<[1], [0], [0], [1], [0, 0, 1, 1], [], []>} : vector<8x128xbf16>, vector<128x128xbf16>, vector<8x128xf32> -> vector<8x128xf32>
    %c0_43 = arith.constant 0 : index
    %c0_44 = arith.constant 0 : index
    %58 = vector.load %arg17[%c0_43, %c0_44] : memref<1x128xf32, #tpu.memory_space<vmem>>, vector<1x128xf32>
    %59 = vector.broadcast %58 : vector<1x128xf32> to vector<8x128xf32>
    %60 = arith.addf %57, %59 : vector<8x128xf32>
    %c0_45 = arith.constant 0 : index
    %c0_46 = arith.constant 0 : index
    %61 = vector.load %arg18[%c0_45, %c0_46] : memref<8x384xf32, #tpu.memory_space<vmem>>, vector<8x128xf32>
    tpu.vector_store %arg18[%c0_45, %c0_46], %60 {strides = array<i32>} : memref<8x384xf32, #tpu.memory_space<vmem>>, vector<8x128xf32>,
    %c0_47 = arith.constant 0 : index
    %c128 = arith.constant 128 : index
    %62 = vector.load %arg18[%c0_47, %c128] : memref<8x384xf32, #tpu.memory_space<vmem>>, vector<8x256xf32>
    tpu.vector_store %arg18[%c0_47, %c128], %28 {strides = array<i32>} : memref<8x384xf32, #tpu.memory_space<vmem>>, vector<8x256xf32>,
    return
  }
  func.func @transform_0(%arg0: i32) -> (i32, i32) {
    %c0_i32 = arith.constant 0 : i32
    %c0_i32_0 = arith.constant 0 : i32
    return %arg0, %c0_i32 : i32, i32
  }
  func.func @transform_1(%arg0: i32) -> (i32, i32) {
    %c0_i32 = arith.constant 0 : i32
    %c0_i32_0 = arith.constant 0 : i32
    return %arg0, %c0_i32 : i32, i32
  }
  func.func @transform_2(%arg0: i32) -> (i32, i32) {
    %c0_i32 = arith.constant 0 : i32
    %c0_i32_0 = arith.constant 0 : i32
    return %arg0, %c0_i32 : i32, i32
  }
  func.func @transform_3(%arg0: i32) -> (i32, i32) {
    %c0_i32 = arith.constant 0 : i32
    %c0_i32_0 = arith.constant 0 : i32
    %c0_i32_1 = arith.constant 0 : i32
    return %c0_i32, %c0_i32_0 : i32, i32
  }
  func.func @transform_4(%arg0: i32) -> (i32, i32) {
    %c0_i32 = arith.constant 0 : i32
    %c0_i32_0 = arith.constant 0 : i32
    %c0_i32_1 = arith.constant 0 : i32
    return %c0_i32, %c0_i32_0 : i32, i32
  }
  func.func @transform_5(%arg0: i32) -> (i32, i32) {
    %c0_i32 = arith.constant 0 : i32
    %c0_i32_0 = arith.constant 0 : i32
    %c0_i32_1 = arith.constant 0 : i32
    return %c0_i32, %c0_i32_0 : i32, i32
  }
  func.func @transform_6(%arg0: i32) -> (i32, i32) {
    %c0_i32 = arith.constant 0 : i32
    %c0_i32_0 = arith.constant 0 : i32
    %c0_i32_1 = arith.constant 0 : i32
    return %c0_i32, %c0_i32_0 : i32, i32
  }
  func.func @transform_7(%arg0: i32) -> (i32, i32) {
    %c0_i32 = arith.constant 0 : i32
    %c0_i32_0 = arith.constant 0 : i32
    %c0_i32_1 = arith.constant 0 : i32
    return %c0_i32, %c0_i32_0 : i32, i32
  }
  func.func @transform_8(%arg0: i32) -> (i32, i32) {
    %c0_i32 = arith.constant 0 : i32
    %c0_i32_0 = arith.constant 0 : i32
    %c0_i32_1 = arith.constant 0 : i32
    return %c0_i32, %c0_i32_0 : i32, i32
  }
  func.func @transform_9(%arg0: i32) -> (i32, i32) {
    %c0_i32 = arith.constant 0 : i32
    %c0_i32_0 = arith.constant 0 : i32
    %c0_i32_1 = arith.constant 0 : i32
    return %c0_i32, %c0_i32_0 : i32, i32
  }
  func.func @transform_10(%arg0: i32) -> (i32, i32) {
    %c0_i32 = arith.constant 0 : i32
    %c0_i32_0 = arith.constant 0 : i32
    %c0_i32_1 = arith.constant 0 : i32
    return %c0_i32, %c0_i32_0 : i32, i32
  }
  func.func @transform_11(%arg0: i32) -> (i32, i32) {
    %c0_i32 = arith.constant 0 : i32
    %c0_i32_0 = arith.constant 0 : i32
    %c0_i32_1 = arith.constant 0 : i32
    return %c0_i32, %c0_i32_0 : i32, i32
  }
  func.func @transform_12(%arg0: i32) -> (i32, i32) {
    %c0_i32 = arith.constant 0 : i32
    %c0_i32_0 = arith.constant 0 : i32
    %c0_i32_1 = arith.constant 0 : i32
    return %c0_i32, %c0_i32_0 : i32, i32
  }
  func.func @transform_13(%arg0: i32) -> (i32, i32) {
    %c0_i32 = arith.constant 0 : i32
    %c0_i32_0 = arith.constant 0 : i32
    %c0_i32_1 = arith.constant 0 : i32
    return %c0_i32, %c0_i32_0 : i32, i32
  }
  func.func @transform_14(%arg0: i32) -> (i32, i32) {
    %c0_i32 = arith.constant 0 : i32
    %c0_i32_0 = arith.constant 0 : i32
    %c0_i32_1 = arith.constant 0 : i32
    return %c0_i32, %c0_i32_0 : i32, i32
  }
  func.func @transform_15(%arg0: i32) -> (i32, i32) {
    %c0_i32 = arith.constant 0 : i32
    %c0_i32_0 = arith.constant 0 : i32
    %c0_i32_1 = arith.constant 0 : i32
    return %c0_i32, %c0_i32_0 : i32, i32
  }
  func.func @transform_16(%arg0: i32) -> (i32, i32) {
    %c0_i32 = arith.constant 0 : i32
    %c0_i32_0 = arith.constant 0 : i32
    %c0_i32_1 = arith.constant 0 : i32
    return %c0_i32, %c0_i32_0 : i32, i32
  }
  func.func @transform_17(%arg0: i32) -> (i32, i32) {
    %c0_i32 = arith.constant 0 : i32
    %c0_i32_0 = arith.constant 0 : i32
    return %arg0, %c0_i32 : i32, i32
  }
}

</mosaic_0001>

<bundles_post_ra>
// kernel: tpu_custom_call.1
= control target key start
LH: loop header
LB: loop body
LE: loop exit
PB: predicated region body
PF: predicated region fallthrough
CT: control target
= control target key end

     0   :  { %s2812_s0 = inlined_call_operand.vmem [shape: f32[24,16], index: 0, kind: input, shape index: {}]   ;;  %s2813_s1 = inlined_call_operand.vmem [shape: f32[24,4], index: 1, kind: input, shape index: {}]   ;;  %s2814_s2 = inlined_call_operand.vmem [shape: f32[24,128], index: 2, kind: input, shape index: {}]   ;;  %s2815_s3 = inlined_call_operand.hbm [shape: bf16[16,128], index: 3, kind: input, shape index: {}]   ;;  %s2816_s4 = inlined_call_operand.vmem [shape: bf16[4,128], index: 4, kind: input, shape index: {}]   ;;  %s2817_s5 = inlined_call_operand.hbm [shape: f32[1,128], index: 5, kind: input, shape index: {}]   ;;  %s2818_s6 = inlined_call_operand.vmem [shape: bf16[128,128], index: 6, kind: input, shape index: {}]   ;;  %s2819_s7 = inlined_call_operand.hbm [shape: f32[1,128], index: 7, kind: input, shape index: {}]   ;;  %s2820_s8 = inlined_call_operand.hbm [shape: bf16[128,256], index: 8, kind: input, shape index: {}]   ;;  %s2821_s9 = inlined_call_operand.vmem [shape: f32[1,256], index: 9, kind: input, shape index: {}]   ;;  %s2822_s10 = inlined_call_operand.hbm [shape: bf16[128,128], index: 10, kind: input, shape index: {}]   ;;  %s2823_s11 = inlined_call_operand.vmem [shape: bf16[4,128], index: 11, kind: input, shape index: {}]   ;;  %s2824_s12 = inlined_call_operand.vmem [shape: f32[1,128], index: 12, kind: input, shape index: {}]   ;;  %s2825_s13 = inlined_call_operand.hbm [shape: bf16[128,128], index: 13, kind: input, shape index: {}]   ;;  %s2826_s14 = inlined_call_operand.vmem [shape: f32[1,128], index: 14, kind: input, shape index: {}]   ;;  %s2827_s15 = inlined_call_operand.hbm [shape: bf16[128,128], index: 15, kind: input, shape index: {}]   ;;  %s2828_s16 = inlined_call_operand.vmem [shape: f32[1,128], index: 16, kind: input, shape index: {}]   ;;  %s2829_s17 = inlined_call_operand.hbm [shape: f32[24,384], index: 17, kind: output, shape index: {}]  }
   0x1   :  { %2842 = sst [smem:[#allocation27_spill]] %s2812_s0 }
   0x2   :  { %2843 = sst [smem:[#allocation28_spill]] %s2813_s1 }
   0x3   :  { %2844 = sst [smem:[#allocation29_spill]] %s2817_s5 }
   0x4   :  { %2845 = sst [smem:[#allocation30_spill]] %s2826_s14 }
   0x5   :  { %2846 = sst [smem:[#allocation31_spill]] %s2828_s16 }
   0x6   :  { %2847 = sst [smem:[#allocation32_spill]] %s2829_s17 }
   0x7   :  { %22 = vsyncpa [#allocation3], 0 }
   0x8   :  { %23 = vsyncpa [#allocation6], 0 }
   0x9   :  { %24 = vsyncpa [#allocation9], 0 }
   0xa   :  { %25 = vsyncpa [#allocation12], 0 }
   0xb   :  { %26 = vsyncpa [#allocation4], 0 }
   0xc   :  { %28 = vsyncpa [#allocation4 + $0x1], 0  ;;  %s2393_s24 = smov 0   ;;  %s2395_s25 = smov 0  }
   0xd   :  { %s2397_s26 = smov 0   ;;  %s2399_s27 = smov 0  }
   0xe LB: > { %2848 = sst [smem:[#allocation20_spill]] %s2274_s24  ;;  %s2414_s28 = sadd.s32 4294967295, %s2286_s27   ;;  %s2286_s27 = sphi %s2399_s27, %s2881_s27   ;;  %s2282_s26 = sphi %s2397_s26, %s2883_s26   ;;  %s2278_s25 = sphi %s2395_s25, %s2885_s25   ;;  %s2274_s24 = sphi %s2393_s24, %s2884_s24  }
   0xf   : > { %2849 = sst [smem:[#allocation21_spill]] %s2282_s26  ;;  %s1613_s29 = sadd.s32 4294967294, %s2286_s27  }
  0x10   : > { %2850 = sst [smem:[#allocation22_spill]] %s2286_s27  ;;  %s2418_s0 = sadd.s32 1, %s2286_s27  }
  0x11   : > { %2851 = sst [smem:[#allocation23_spill]] %s2418_s0  ;;  %s413_s30 = sadd.s32 1, %s2282_s26 }
  0x12   : > { %s410_s18 = ssub.s32 %s2286_s27, %s2418_s0  ;;  %p423_p0 = scmp.ne.s32.totalorder %s2282_s26, %s2278_s25 }
  0x13   : > { %p411_p1 = scmp.eq.s32.totalorder %s410_s18, 0  ;;  %p424_p2 = scmp.eq.s32.totalorder %s2414_s28, 2 }
  0x14   : > { %p429_p3 = scmp.ne.s32.totalorder %s2278_s25, %s2274_s24  ;;  %p430_p4 = scmp.eq.s32.totalorder %s1613_s29, 2 }
  0x15   : > { %s2429_s19 = scalar_select %p411_p1, %s2282_s26, %s413_s30  }
  0x16   : > { %p2431_p5 = por %p424_p2, %p423_p0  ;;  %p2435_p6 = por %p430_p4, %p429_p3 }
  0x17   : > { %2852 = sst [smem:[#allocation24_spill]] %s2429_s19  ;;  %p1614_p7 = scmp.ge.s32.totalorder %s2286_s27, 1 }
  0x18   : > { %s2853_s1 = scalar_select %p2431_p5, 1, 0 }
  0x19   : > { %s2855_s20 = scalar_select %p2435_p6, 1, 0 }
  0x1a   : > { %2854 = sst [smem:[#allocation25_spill]] %s2853_s1  ;;  %p437_p8 = scmp.lt.s32.totalorder %s2286_s27, 4 }
  0x1b   : > { %2856 = sst [smem:[#allocation26_spill]] %s2855_s20  ;;  %p2836_p9 = scmp.eq.s32.totalorder %s2414_s28, 0 }
  0x1c   : > { %p2442_p10 = pnand %p1614_p7, %p437_p8  ;;  %s2288_s22 = smov [#allocation5]  }
  0x1d   : > { %s466_s23 = sshll.u32 %s2288_s22, 4  ;;  %s2289_s29 = smov [#allocation8]   ;;  %s467_s23 = int_to_ptr.vmem [resolvable:$true] %s466_s23 }
  0x1e   : > { %s2857_s21 = scalar_select %p2442_p10, 1, 0 }
  0x1f   : > { %p1866_p11 = pneg %p2442_p10  ;;  %s490_s30 = sshll.u32 %s2289_s29, 4  ;;  %s2454_s30 = int_to_ptr.vmem [resolvable:$true] %s490_s30 }
  0x20   : > { %s2859_s5 = sld [smem:[#allocation29_spill]] }
  0x21   : > { %p2450_p12 = pnand %p2836_p9, %p1866_p11 }
  0x23   : > { %p2464_p0 = pneg %p2450_p12 }
  0x26   : > { %s2012_s0 = scalar_lea.hbm %s2859_s5, 16 }
  0x27   : > { %p2013_p13 = scmp.ne.s32.totalorder %s2859_s5, %s2012_s0  ;;  %p2019_p3 = scmp.lt.u32.totalorder %s2012_s0, %s2859_s5 }
  0x29   : > { %p2015_p1 = pnand %p2464_p0, %p2013_p13 }
  0x2b   : > { %p2016_p2 = pneg %p2015_p1 }
  0x2d   : > { %p2021_p4 = pnand %p2019_p3, %p2016_p2 }
  0x2f   : > { %2024 = shalt.err (!%p2021_p4)
}
  0x30   : > { %s2025_s26 = scalar_lea.vmem %s467_s23, 16  ;;  %s2032_s24 = scalar_lea.vmem %s467_s23, 32 }
  0x31   : > { %p2026_p7 = scmp.ne.s32.totalorder %s467_s23, %s2025_s26  ;;  %p2033_p9 = scmp.lt.s32.totalorder %s467_s23, %s467_s23 }
  0x32   : > { %p2034_p6 = scmp.lt.s32.totalorder %s2032_s24, %s2025_s26 }
  0x33   : > { %p2028_p8 = pnand %p2026_p7, %p2464_p0 }
  0x34   : > { %p2035_p5 = por %p2034_p6, %p2033_p9 }
  0x35   : > { %p2029_p11 = pneg %p2028_p8 }
  0x37   : > { %p2036_p10 = pnand %p2035_p5, %p2029_p11 }
  0x39   : > { %2039 = shalt.err (!%p2036_p10)
}
  0x3a   : > { %1872 = dma.hbm_to_vmem [thread:$0]  (!%p2450_p12), %s2859_s5, 16, %s467_s23, [#allocation6]  }
  0x3b   : > { %s2040_s29 = scalar_lea.hbm %s2820_s8, 2048 }
  0x3c   : > { %p2041_p13 = scmp.ne.s32.totalorder %s2820_s8, %s2040_s29  ;;  %p2047_p5 = scmp.lt.u32.totalorder %s2040_s29, %s2820_s8 }
  0x3e   : > { %p2043_p1 = pnand %p2041_p13, %p2464_p0 }
  0x40   : > { %p2044_p6 = pneg %p2043_p1 }
  0x42   : > { %p2049_p9 = pnand %p2047_p5, %p2044_p6 }
  0x44   : > { %2052 = shalt.err (!%p2049_p9)
}
  0x45   : > { %s2053_s23 = scalar_lea.vmem %s2454_s30, 2048  ;;  %p2061_p4 = scmp.lt.s32.totalorder %s2454_s30, %s2454_s30 }
  0x46   : > { %p2054_p10 = scmp.ne.s32.totalorder %s2454_s30, %s2053_s23  ;;  %p2062_p7 = scmp.lt.s32.totalorder %s2053_s23, %s2053_s23 }
  0x48   : > { %p2056_p2 = pnand %p2054_p10, %p2464_p0  ;;  %p2063_p8 = por %p2062_p7, %p2061_p4 }
  0x4a   : > { %p2057_p3 = pneg %p2056_p2 }
  0x4c   : > { %p2064_p11 = pnand %p2063_p8, %p2057_p3 }
  0x4e   : > { %2067 = shalt.err (!%p2064_p11)
}
  0x4f   : > { %s2290_s16 = smov 128   ;;  %s2291_s17 = smov 8  }
  0x50   : > { %1878 = dma.hbm_to_vmem [thread:$0]  (!%p2450_p12), %s2820_s8, 2048, %s2454_s30, [#allocation9], %s2290_s16, %s2290_s16, %s2291_s17  }
  0x51   : > { %s2292_s27 = smov [#allocation11]   ;;  %s2293_s29 = smov [#allocation2]  }
  0x52   : > { %s525_s0 = sshll.u32 %s2292_s27, 4  ;;  %s449_s26 = sshll.u32 %s2293_s29, 4  ;;  %s526_s0 = int_to_ptr.vmem [resolvable:$true] %s525_s0  ;;  %s2503_s26 = int_to_ptr.vmem [resolvable:$true] %s449_s26 }
  0x53   : > { %s2068_s5 = scalar_lea.hbm %s2825_s13, 1024 }
  0x54   : > { %p2069_p13 = scmp.ne.s32.totalorder %s2825_s13, %s2068_s5  ;;  %p2075_p5 = scmp.lt.u32.totalorder %s2068_s5, %s2825_s13 }
  0x56   : > { %p2071_p1 = pnand %p2069_p13, %p2464_p0 }
  0x58   : > { %p2072_p6 = pneg %p2071_p1 }
  0x5a   : > { %p2077_p9 = pnand %p2075_p5, %p2072_p6 }
  0x5c   : > { %2080 = shalt.err (!%p2077_p9)
}
  0x5d   : > { %s2081_s16 = scalar_lea.vmem %s526_s0, 1024  ;;  %p2089_p4 = scmp.lt.s32.totalorder %s526_s0, %s526_s0 }
  0x5e   : > { %p2082_p10 = scmp.ne.s32.totalorder %s526_s0, %s2081_s16  ;;  %p2090_p7 = scmp.lt.s32.totalorder %s2081_s16, %s2081_s16 }
  0x60   : > { %p2084_p2 = pnand %p2082_p10, %p2464_p0  ;;  %p2091_p8 = por %p2090_p7, %p2089_p4 }
  0x62   : > { %p2085_p3 = pneg %p2084_p2 }
  0x64   : > { %p2092_p11 = pnand %p2091_p8, %p2085_p3 }
  0x66   : > { %2095 = shalt.err (!%p2092_p11)
}
  0x67   : > { %s2294_s14 = smov 64   ;;  %s2295_s1 = smov 4  }
  0x68   : > { %1884 = dma.hbm_to_vmem [thread:$0]  (!%p2450_p12), %s2825_s13, 1024, %s526_s0, [#allocation12], %s2294_s14, %s2294_s14, %s2295_s1  }
  0x69   : > { %s2096_s29 = scalar_lea.hbm %s2815_s3, 128 }
  0x6a   : > { %p2097_p13 = scmp.ne.s32.totalorder %s2815_s3, %s2096_s29  ;;  %p2103_p5 = scmp.lt.u32.totalorder %s2096_s29, %s2815_s3 }
  0x6c   : > { %p2099_p1 = pnand %p2097_p13, %p2464_p0 }
  0x6e   : > { %p2100_p6 = pneg %p2099_p1 }
  0x70   : > { %p2105_p9 = pnand %p2103_p5, %p2100_p6 }
  0x72   : > { %2108 = shalt.err (!%p2105_p9)
}
  0x73   : > { %s2109_s0 = scalar_lea.vmem %s2503_s26, 128  ;;  %p2117_p4 = scmp.lt.s32.totalorder %s2503_s26, %s2503_s26 }
  0x74   : > { %p2110_p10 = scmp.ne.s32.totalorder %s2503_s26, %s2109_s0  ;;  %p2118_p7 = scmp.lt.s32.totalorder %s2109_s0, %s2109_s0 }
  0x76   : > { %p2112_p2 = pnand %p2110_p10, %p2464_p0  ;;  %p2119_p8 = por %p2118_p7, %p2117_p4 }
  0x78   : > { %p2113_p3 = pneg %p2112_p2 }
  0x7a   : > { %p2120_p11 = pnand %p2119_p8, %p2113_p3 }
  0x7c   : > { %2123 = shalt.err (!%p2120_p11)
}
  0x7d   : > { %1869 = dma.hbm_to_vmem [thread:$0]  (!%p2450_p12), %s2815_s3, 128, %s2503_s26, [#allocation3], %s2294_s14, %s2294_s14, %s2295_s1  }
  0x7e   : > { %s2296_s17 = smov [#allocation7]   ;;  %s2297_s27 = smov [#allocation10]  }
  0x7f   : > { %s480_s20 = sshll.u32 %s2296_s17, 4  ;;  %s506_s29 = sshll.u32 %s2297_s27, 4  ;;  %s481_s20 = int_to_ptr.vmem [resolvable:$true] %s480_s20  ;;  %s2552_s29 = int_to_ptr.vmem [resolvable:$true] %s506_s29 }
  0x80   : > { %s2124_s19 = scalar_lea.hbm %s2819_s7, 16 }
  0x81   : > { %p2125_p13 = scmp.ne.s32.totalorder %s2819_s7, %s2124_s19  ;;  %p2131_p5 = scmp.lt.u32.totalorder %s2124_s19, %s2819_s7 }
  0x83   : > { %p2127_p1 = pnand %p2125_p13, %p2464_p0 }
  0x85   : > { %p2128_p6 = pneg %p2127_p1 }
  0x87   : > { %p2133_p9 = pnand %p2131_p5, %p2128_p6 }
  0x89   : > { %2136 = shalt.err (!%p2133_p9)
}
  0x8a   : > { %s2137_s5 = scalar_lea.vmem %s481_s20, 16  ;;  %s2144_s17 = scalar_lea.vmem %s481_s20, 32 }
  0x8b   : > { %p2138_p10 = scmp.ne.s32.totalorder %s481_s20, %s2137_s5  ;;  %p2145_p4 = scmp.lt.s32.totalorder %s481_s20, %s481_s20 }
  0x8c   : > { %p2146_p7 = scmp.lt.s32.totalorder %s2144_s17, %s2137_s5 }
  0x8d   : > { %p2140_p2 = pnand %p2138_p10, %p2464_p0 }
  0x8e   : > { %p2147_p8 = por %p2146_p7, %p2145_p4 }
  0x8f   : > { %p2141_p3 = pneg %p2140_p2 }
  0x91   : > { %p2148_p11 = pnand %p2147_p8, %p2141_p3 }
  0x93   : > { %2151 = shalt.err (!%p2148_p11)
}
  0x94   : > { %1875 = dma.hbm_to_vmem [thread:$0]  (!%p2450_p12), %s2819_s7, 16, %s481_s20, [#allocation6]  }
  0x95   : > { %s2152_s30 = scalar_lea.hbm %s2822_s10, 1024 }
  0x96   : > { %p2153_p13 = scmp.ne.s32.totalorder %s2822_s10, %s2152_s30  ;;  %p2159_p5 = scmp.lt.u32.totalorder %s2152_s30, %s2822_s10 }
  0x98   : > { %p2155_p1 = pnand %p2153_p13, %p2464_p0 }
  0x9a   : > { %p2156_p6 = pneg %p2155_p1 }
  0x9c   : > { %p2161_p9 = pnand %p2159_p5, %p2156_p6 }
  0x9e   : > { %2164 = shalt.err (!%p2161_p9)
}
  0x9f   : > { %s2165_s20 = scalar_lea.vmem %s2552_s29, 1024  ;;  %p2173_p4 = scmp.lt.s32.totalorder %s2552_s29, %s2552_s29 }
  0xa0   : > { %p2166_p10 = scmp.ne.s32.totalorder %s2552_s29, %s2165_s20  ;;  %p2174_p7 = scmp.lt.s32.totalorder %s2165_s20, %s2165_s20 }
  0xa2   : > { %p2168_p2 = pnand %p2166_p10, %p2464_p0  ;;  %p2175_p8 = por %p2174_p7, %p2173_p4 }
  0xa4   : > { %p2169_p3 = pneg %p2168_p2 }
  0xa6   : > { %p2176_p11 = pnand %p2175_p8, %p2169_p3 }
  0xa8   : > { %2179 = shalt.err (!%p2176_p11)
}
  0xa9   : > { %1881 = dma.hbm_to_vmem [thread:$0]  (!%p2450_p12), %s2822_s10, 1024, %s2552_s29, [#allocation9], %s2294_s14, %s2294_s14, %s2295_s1  }
  0xaa   : > { %s2298_s24 = smov [#allocation13]   ;;  %s2180_s0 = scalar_lea.hbm %s2827_s15, 1024 }
  0xab   : > { %s541_s23 = sshll.u32 %s2298_s24, 4  ;;  %p2181_p13 = scmp.ne.s32.totalorder %s2827_s15, %s2180_s0  ;;  %s542_s23 = int_to_ptr.vmem [resolvable:$true] %s541_s23 }
  0xac   : > { %p2187_p5 = scmp.lt.u32.totalorder %s2180_s0, %s2827_s15 }
  0xad   : > { %p2183_p1 = pnand %p2181_p13, %p2464_p0 }
  0xaf   : > { %p2184_p6 = pneg %p2183_p1 }
  0xb1   : > { %p2189_p9 = pnand %p2187_p5, %p2184_p6 }
  0xb3   : > { %2192 = shalt.err (!%p2189_p9)
}
  0xb4   : > { %s2193_s29 = scalar_lea.vmem %s542_s23, 1024  ;;  %p2201_p4 = scmp.lt.s32.totalorder %s542_s23, %s542_s23 }
  0xb5   : > { %p2194_p10 = scmp.ne.s32.totalorder %s542_s23, %s2193_s29  ;;  %p2202_p7 = scmp.lt.s32.totalorder %s2193_s29, %s2193_s29 }
  0xb7   : > { %p2196_p2 = pnand %p2194_p10, %p2464_p0  ;;  %p2203_p8 = por %p2202_p7, %p2201_p4 }
  0xb9   : > { %p2197_p3 = pneg %p2196_p2 }
  0xbb   : > { %p2204_p11 = pnand %p2203_p8, %p2197_p3 }
  0xbd   : > { %2207 = shalt.err (!%p2204_p11)
}
  0xbe   : > { %1887 = dma.hbm_to_vmem [thread:$0]  (!%p2450_p12), %s2827_s15, 1024, %s542_s23, [#allocation12], %s2294_s14, %s2294_s14, %s2295_s1  }
  0xbf   : > { %p2861_p13 = scmp.ne.s32.totalorder %s2857_s21, 0 }
  0xc0   : > { %p2862_p0 = scmp.eq.s32.totalorder (!%p2861_p13), %s2414_s28, 0 }
  0xc1   : > { %581 = sbr.rel (%p2861_p13) target bundleno = 1568 (0x620), region = 88 }
  0xc8   : > { %2253 = dma.done.wait (%p2862_p0), [#allocation3], 128   ;;  %p2863_p1 = pmov %p2862_p0 }
  0xc9   : > { %p2864_p6 = pmov %p2862_p0 }
  0xca   : > { %2255 = vsyncadd (%p2863_p1), [#allocation3], 4294967168 }
  0xcb   : > { %2257 = dma.done.wait (%p2864_p6), [#allocation6], 32   ;;  %p2865_p5 = pmov %p2862_p0 }
  0xcc   : > { %p2866_p9 = pmov %p2862_p0 }
  0xcd   : > { %2259 = vsyncadd (%p2865_p5), [#allocation6], 4294967264 }
  0xce   : > { %2261 = dma.done.wait (%p2866_p9), [#allocation9], 3072   ;;  %p2867_p12 = pmov %p2862_p0 }
  0xcf   : > { %p2868_p10 = pmov %p2862_p0 }
  0xd0   : > { %2263 = vsyncadd (%p2867_p12), [#allocation9], 4294964224 }
  0xd1   : > { %2265 = dma.done.wait (%p2868_p10), [#allocation12], 2048   ;;  %p2869_p2 = pmov %p2862_p0 }
  0xd2   : > { %p664_p3 = scmp.lt.s32.totalorder %s2414_s28, 2  ;;  %v2299_v0 = vmov 0.0   ;;  %vm2300_vm0 = vmmov 0   ;;  %vm689_vm1 = vcmask 1041408   ;;  %s2870_s1 = sld [smem:[#allocation28_spill]]  ;;  %vm685_vm2 = vcmask 31744  }
  0xd3   : > { %2267 = vsyncadd (%p2869_p2), [#allocation12], 4294965248  ;;  %1736 = vmatprep.subr.bf16.mxu0 %v2299_v0  ;;  %1738 = vmatprep.mubr.msk.bf16.mxu0 %vm2300_vm0, %v2299_v0  ;;  %v684_v1 = vld [vmem:[%s2816_s4] sm:$0x3]  ;;  %v1953_v5 = vld [vmem:[#allocation2] sm:$0xff]   ;;  %s2871_s16 = sld [smem:[#allocation27_spill]] }
  0xd4   : > { %s665_s21 = scalar_select %p664_p3, %s2414_s28, 2  ;;  %v691_v3 = vsel %vm689_vm1, %v684_v1, 0  ;;  %v1954_v7 = vld [vmem:[%s2818_s6] sm:$0xff]   ;;  %vm739_vm3 = vcmask 130048   ;;  %v1955_v9 = vld [vmem:[%s2818_s6 + $0x8] sm:$0xff]   ;;  %v1956_v10 = vld [vmem:[%s2818_s6 + $0x10] sm:$0xff]  }
  0xd5   : > { %1737 = vmatpush3.bf16.msra.mxu0 %v691_v3  ;;  %v1957_v11 = vld [vmem:[%s2818_s6 + $0x18] sm:$0xff]   ;;  %v1958_v12 = vld [vmem:[%s2818_s6 + $0x20] sm:$0xff]   ;;  %v1959_v13 = vld [vmem:[%s2818_s6 + $0x28] sm:$0xff]   ;;  %v2301_v47 = vmov 0   ;;  %s661_s29 = sand.u32 1, %s2278_s25   ;;  %s2872_s0 = sld [smem:[#allocation30_spill]] }
  0xd6   : > { %s2642_s18 = sshll.u32 %s665_s21, 3  ;;  %1742 = vmatprep.subr.bf16.mxu0 %v2299_v0  ;;  %v1960_v14 = vld [vmem:[%s2818_s6 + $0x30] sm:$0xff]   ;;  %v1961_v15 = vld [vmem:[%s2818_s6 + $0x38] sm:$0xff]   ;;  %v1964_v17 = vld [vmem:[#allocation8] ss:$8 sps:$4 sm:$0xff]   ;;  %1046 = vmatprep.mubr.bf16.mxu1 %v2301_v47  ;;  %s1834_s21 = smul.u32 24, %s661_s29 }
  0xd7   : > { %v1962_v16 = vld [vmem:[#allocation8 + $0x4] ss:$8 sps:$4 sm:$0xff]   ;;  %v1965_v18 = vld [vmem:[#allocation8 + $0x14] ss:$8 sps:$4 sm:$0xff]   ;;  %v1967_v19 = vld [vmem:[#allocation8 + $0x10] ss:$8 sps:$4 sm:$0xff]  }
  0xd8   : > { %s671_s24 = scalar_lea.vmem %s2870_s1, %s2642_s18  ;;  %1014 = vmatprep.subr.bf16.mxu1 %v1962_v16  ;;  %v1968_v20 = vld [vmem:[#allocation8 + $0x24] ss:$8 sps:$4 sm:$0xff]   ;;  %v1970_v21 = vld [vmem:[#allocation8 + $0x20] ss:$8 sps:$4 sm:$0xff]   ;;  %v1971_v22 = vld [vmem:[#allocation8 + $0x34] ss:$8 sps:$4 sm:$0xff]  }
  0xd9   : > { %v679_v2 = vld [vmem:[%s671_s24] sm:$0xff]  ;;  %s667_s26 = scalar_lea.vmem %s2871_s16, %s2642_s18  ;;  %1015 = vmatpush1.bf16.msra.mxu1 %v1964_v17  ;;  %v1973_v23 = vld [vmem:[#allocation8 + $0x30] ss:$8 sps:$4 sm:$0xff]   ;;  %v1974_v24 = vld [vmem:[#allocation8 + $0x44] ss:$8 sps:$4 sm:$0xff]   ;;  %s2734_s22 = scalar_lea.vmem [#allocation14], %s1834_s21 }
  0xda   : > { %v2652_v4 = vpack.c.bf16 %v679_v2, %v679_v2  ;;  %v677_v6 = vld [vmem:[%s667_s26] sm:$0xff]  ;;  %1016 = vmatprep.subr.bf16.mxu1 %v1965_v18  ;;  %v1979_v27 = vld [vmem:[#allocation8 + $0x50] ss:$8 sps:$4 sm:$0xff]   ;;  %v1980_v28 = vld [vmem:[#allocation8 + $0x64] ss:$8 sps:$4 sm:$0xff]   ;;  %s675_s24 = scalar_lea.vmem %s2814_s2, %s2642_s18  ;;  %s2873_s16 = sld [smem:[#allocation25_spill]] }
  0xdb   : > { %v678_v8 = vpack.c.bf16 %v677_v6, %v677_v6  ;;  %v1976_v25 = vld [vmem:[#allocation8 + $0x40] ss:$8 sps:$4 sm:$0xff]   ;;  %v1977_v26 = vld [vmem:[#allocation8 + $0x54] ss:$8 sps:$4 sm:$0xff]   ;;  %v1985_v46 = vld [vmem:[#allocation8 + $0x70] ss:$8 sps:$4 sm:$0xff]  }
  0xdc   : > { %1739 = vmatmul.mubr.msk.bf16.vlgmr.msra.gmra.mrb[0].mxu0 %vm685_vm2, %v2652_v4  ;;  %v1637_v34 = vld [vmem:[#allocation5] ss:$0 sm:$0xff]  ;;  %v1982_v44 = vld [vmem:[#allocation8 + $0x60] ss:$8 sps:$4 sm:$0xff]   ;;  %v1638_v48 = vld [vmem:[#allocation7] ss:$0 sm:$0xff] }
  0xdd   : > { %1743 = vmatpush3.bf16.msra.mxu0 %v1953_v5  ;;  %1744 = vmatprep.mubr.msk.bf16.mxu0 %vm2300_vm0, %v2299_v0  ;;  %v1077_v40 = vld [vmem:[%s2823_s11] sm:$0x3]  ;;  %v1986_v55 = vld [vmem:[#allocation10] sm:$0xff]   ;;  %v1987_v57 = vld [vmem:[#allocation10 + $0x8] sm:$0xff]   ;;  %s1835_s26 = smul.u32 384, %s2414_s28  ;;  %s2874_s17 = sld [smem:[#allocation31_spill]] }
  0xde   : > { %1748 = vmatprep.subr.bf16.mxu0 %v2299_v0  ;;  %1017 = vmatpush1.bf16.msra.mxu1 %v1967_v19  ;;  %v1079_v42 = vsel %vm689_vm1, %v1077_v40, 0  ;;  %v1983_v45 = vld [vmem:[#allocation8 + $0x74] ss:$8 sps:$4 sm:$0xff]   ;;  %v1990_v60 = vld [vmem:[#allocation10 + $0x20] sm:$0xff]   ;;  %v1991_v61 = vld [vmem:[#allocation10 + $0x28] sm:$0xff]   ;;  %s1461_s27 = sshll.u32 %s2734_s22, 4  ;;  %s2769_s27 = int_to_ptr.vmem [resolvable:$true] %s1461_s27 }
  0xdf   : > { %1018 = vmatprep.subr.bf16.mxu1 %v1968_v20  ;;  %v1988_v58 = vld [vmem:[#allocation10 + $0x10] sm:$0xff]   ;;  %v1989_v59 = vld [vmem:[#allocation10 + $0x18] sm:$0xff]   ;;  %v1994_v1 = vld [vmem:[#allocation11] sm:$0xff]   ;;  %s2875_s1 = sld [smem:[#allocation32_spill]]  ;;  %s1447_s28 = scalar_lea.sflag [#allocation4], %s661_s29 }
  0xe0   : > { %v1992_v62 = vld [vmem:[#allocation10 + $0x30] sm:$0xff]   ;;  %v1993_v63 = vld [vmem:[#allocation10 + $0x38] sm:$0xff]   ;;  %s2208_s18 = scalar_lea.vmem %s2769_s27, 384  ;;  %p2876_p7 = scmp.ne.s32.totalorder %s2873_s16, 0 }
  0xe1   : > { %v1672_v40 = vld [vmem:[%s2824_s12] ss:$0 sm:$0xff]  ;;  %p2209_p4 = scmp.ne.s32.totalorder %s2769_s27, %s2208_s18  ;;  %s2302_s23 = smov [#allocation14]  }
  0xe2   : > { %1019 = vmatpush1.bf16.msra.mxu1 %v1970_v21  ;;  %s2212_s19 = sshll.u32 %s2302_s23, 4  ;;  %s2213_s19 = int_to_ptr.vmem [resolvable:$false] %s2212_s19 }
  0xe3   : > { %1020 = vmatprep.subr.bf16.mxu1 %v1971_v22  ;;  %p2210_p8 = pnand %p2209_p4, %p2876_p7  ;;  %s2214_s30 = scalar_lea.vmem %s2213_s19, 768 }
  0xe4   : > { %1745 = vmatmul.mubr.msk.bf16.vlgmr.msra.gmra.mrb[4].mxu0 %vm739_vm3, %v678_v8  ;;  %v1997_v8 = vld [vmem:[#allocation11 + $0x18] sm:$0xff]   ;;  %p2215_p13 = scmp.lt.s32.totalorder %s2769_s27, %s2213_s19  ;;  %p2216_p0 = scmp.lt.s32.totalorder %s2214_s30, %s2208_s18 }
  0xe5   : > { %1749 = vmatpush3.bf16.msra.mxu0 %v1954_v7  ;;  %1764 = vmatprep.mubr.msk.bf16.mxu0 %vm2300_vm0, %v2299_v0  ;;  %v1996_v7 = vld [vmem:[#allocation11 + $0x10] sm:$0xff]   ;;  %p2211_p11 = pneg %p2210_p8 }
  0xe6   : > { %1750 = vmatprep.subr.bf16.mxu0 %v2299_v0  ;;  %1021 = vmatpush1.bf16.msra.mxu1 %v1973_v23  ;;  %p2217_p1 = por %p2216_p0, %p2215_p13 }
  0xe7   : > { %1022 = vmatprep.subr.bf16.mxu1 %v1974_v24 }
  0xe8   : > { %p2218_p6 = pnand %p2217_p1, %p2211_p11 }
  0xe9   : > { %1751 = vmatpush3.bf16.msra.mxu0 %v1955_v9  ;;  %v1998_v9 = vld [vmem:[#allocation11 + $0x20] sm:$0xff]  }
  0xea   : > { %1752 = vmatprep.subr.bf16.mxu0 %v2299_v0  ;;  %1023 = vmatpush1.bf16.msra.mxu1 %v1976_v25 }
  0xeb   : > { %1024 = vmatprep.subr.bf16.mxu1 %v1977_v26  ;;  %v681_v26 = vld [vmem:[%s675_s24] sm:$0xff]  ;;  %s2767_s24 = scalar_lea.hbm %s2875_s1, %s1835_s26 }
  0xed   : > { %1753 = vmatpush3.bf16.msra.mxu0 %v1956_v10  ;;  %v1999_v10 = vld [vmem:[#allocation11 + $0x28] sm:$0xff]  }
  0xee   : > { %1754 = vmatprep.subr.bf16.mxu0 %v2299_v0  ;;  %1025 = vmatpush1.bf16.msra.mxu1 %v1979_v27 }
  0xef   : > { %1026 = vmatprep.subr.bf16.mxu1 %v1980_v28 }
  0xf1   : > { %1755 = vmatpush3.bf16.msra.mxu0 %v1957_v11  ;;  %v924_v11 = vlaneseq }
  0xf2   : > { %1756 = vmatprep.subr.bf16.mxu0 %v2299_v0  ;;  %1027 = vmatpush1.bf16.msra.mxu1 %v1982_v44 }
  0xf3   : > { %1028 = vmatprep.subr.bf16.mxu1 %v1983_v45 }
  0xf5   : > { %1757 = vmatpush3.bf16.msra.mxu0 %v1958_v12  ;;  %v925_v12 = vshrl.u32 %v924_v11, 7 }
  0xf6   : > { %1758 = vmatprep.subr.bf16.mxu0 %v2299_v0  ;;  %1029 = vmatpush1.bf16.msra.mxu1 %v1985_v46 }
  0xf7   : > { %1774 = vmatprep.subr.bf16.mxu1 %v2299_v0 }
  0xf9   : > { %1759 = vmatpush3.bf16.msra.mxu0 %v1959_v13  ;;  %v926_v13 = vsub.s32 0, %v925_v12 }
  0xfa   : > { %1760 = vmatprep.subr.bf16.mxu0 %v2299_v0 }
  0xfd   : > { %1761 = vmatpush3.bf16.msra.mxu0 %v1960_v14  ;;  %v922_v14 = vld [vmem:[%s2821_s9] sm:$0x3] }
  0xfe   : > { %1762 = vmatprep.subr.bf16.mxu0 %v2299_v0  ;;  %v927_v16 = vrot.slane %v922_v14, %v926_v13 }
 0x101   : > { %1763 = vmatpush3.bf16.msra.mxu0 %v1961_v15  ;;  %v930_v15 = vsub.s32 1, %v925_v12 }
 0x102   : > { %1768 = vmatprep.subr.bf16.mxu0 %v2299_v0 }
 0x103   : > { %v931_v17 = vrot.slane %v922_v14, %v930_v15 }
 0x1af   : > { %v727_v29 = vpop.f32.mrb[0].mxu0 }
 0x1b0   : > { %v1740_v30 = vpop.f32.mrb[1].mxu0 }
 0x1b1   : > { %v730_v31 = vpop.f32.mrb[2].mxu0 }
 0x1b2   : > { %v1741_v32 = vpop.f32.mrb[3].mxu0  ;;  %v2000_v31 = vld [vmem:[#allocation11 + $0x30] sm:$0xff]  }
 0x1b3   : > { %v2001_v32 = vld [vmem:[#allocation11 + $0x38] sm:$0xff]  }
 0x1b7   : > { %v777_v33 = vpop.f32.mrb[4].mxu0 }
 0x1b8   : > { %v778_v35 = vadd.f32 %v777_v33, %v727_v29  ;;  %v1746_v36 = vpop.f32.mrb[5].mxu0  ;;  %v2002_v33 = vld [vmem:[#allocation13] sm:$0xff]  }
 0x1b9   : > { %v780_v37 = vpop.f32.mrb[6].mxu0  ;;  %v2005_v36 = vld [vmem:[#allocation13 + $0x18] sm:$0xff]  }
 0x1ba   : > { %v790_v38 = vadd.f32 %v1637_v34, %v778_v35  ;;  %v1747_v39 = vpop.f32.mrb[7].mxu0  ;;  %v2003_v34 = vld [vmem:[#allocation13 + $0x8] sm:$0xff]   ;;  %v2004_v35 = vld [vmem:[#allocation13 + $0x10] sm:$0xff]   ;;  %v2006_v37 = vld [vmem:[#allocation13 + $0x20] sm:$0xff]  }
 0x1bc   : > { %v791_v41 = vmax.f32 %v790_v38, 0.0  ;;  %v2007_v38 = vld [vmem:[#allocation13 + $0x28] sm:$0xff]  }
 0x1be   : > { %v792_v43 = vpack.c.bf16 %v791_v41, %v791_v41 }
 0x1c0   : > { %1765 = vmatmul.mubr.bf16.vlgmr.msra.gmra.mrb[8].mxu0 %v792_v43 }
 0x1c1   : > { %1769 = vmatpush3.bf16.msra.mxu0 %v1079_v42  ;;  %1770 = vmatprep.mubr.msk.bf16.mxu0 %vm2300_vm0, %v2299_v0 }
 0x1c2   : > { %1794 = vmatprep.subr.bf16.mxu0 %v2299_v0 }
 0x1c8   : > { %1771 = vmatmul.mubr.msk.bf16.vlgmr.msra.gmra.mrb[12].mxu0 %vm685_vm2, %v2652_v4  ;;  %v1995_v4 = vld [vmem:[#allocation11 + $0x8] sm:$0xff]  }
 0x1c9   : > { %1810 = vmatprep.mubr.msk.bf16.mxu0 %vm2300_vm0, %v2299_v0  ;;  %1795 = vmatpush3.bf16.msra.mxu0 %v1994_v1 }
 0x1ca   : > { %1796 = vmatprep.subr.bf16.mxu0 %v2299_v0 }
 0x1cd   : > { %1797 = vmatpush3.bf16.msra.mxu0 %v1995_v4 }
 0x1ce   : > { %1798 = vmatprep.subr.bf16.mxu0 %v2299_v0 }
 0x1d1   : > { %1799 = vmatpush3.bf16.msra.mxu0 %v1996_v7 }
 0x1d2   : > { %1800 = vmatprep.subr.bf16.mxu0 %v2299_v0 }
 0x1d5   : > { %1801 = vmatpush3.bf16.msra.mxu0 %v1997_v8 }
 0x1d6   : > { %1802 = vmatprep.subr.bf16.mxu0 %v2299_v0 }
 0x1d9   : > { %1803 = vmatpush3.bf16.msra.mxu0 %v1998_v9 }
 0x1da   : > { %1804 = vmatprep.subr.bf16.mxu0 %v2299_v0 }
 0x1dd   : > { %1805 = vmatpush3.bf16.msra.mxu0 %v1999_v10 }
 0x1de   : > { %1806 = vmatprep.subr.bf16.mxu0 %v2299_v0 }
 0x1e1   : > { %1807 = vmatpush3.bf16.msra.mxu0 %v2000_v31 }
 0x1e2   : > { %1808 = vmatprep.subr.bf16.mxu0 %v2299_v0 }
 0x1e5   : > { %1809 = vmatpush3.bf16.msra.mxu0 %v2001_v32 }
 0x293   : > { %v898_v49 = vpop.f32.mrb[8].mxu0 }
 0x294   : > { %v899_v50 = vadd.f32 %v1638_v48, %v898_v49  ;;  %v1766_v51 = vpop.f32.mrb[9].mxu0  ;;  %v2008_v48 = vld [vmem:[#allocation13 + $0x30] sm:$0xff]   ;;  %v2009_v49 = vld [vmem:[#allocation13 + $0x38] sm:$0xff]  }
 0x295   : > { %v901_v52 = vpop.f32.mrb[10].mxu0 }
 0x296   : > { %v904_v53 = vmax.f32 %v899_v50, 0.0  ;;  %v1767_v54 = vpop.f32.mrb[11].mxu0  ;;  %v1673_v50 = vld [vmem:[%s2872_s0] ss:$0 sm:$0xff] }
 0x298   : > { %v905_v56 = vpack.c.bf16 %v904_v53, %v904_v53 }
 0x29a   : > { %1047 = vmatmul.mubr.bf16.vlgmr.msra.gmra.mrb[0].mxu1 %v905_v56 }
 0x29b   : > { %1775 = vmatpush3.bf16.msra.mxu1 %v1986_v55  ;;  %1790 = vmatprep.mubr.msk.bf16.mxu1 %vm2300_vm0, %v2299_v0  ;;  %v2720_v2 = vpop.f32.mrb[12].mxu0 }
 0x29c   : > { %1776 = vmatprep.subr.bf16.mxu1 %v2299_v0  ;;  %v1772_v3 = vpop.f32.mrb[13].mxu0 }
 0x29d   : > { %v1118_v5 = vpop.f32.mrb[14].mxu0 }
 0x29e   : > { %v1773_v6 = vpop.f32.mrb[15].mxu0 }
 0x29f   : > { %1777 = vmatpush3.bf16.msra.mxu1 %v1987_v57 }
 0x2a0   : > { %1778 = vmatprep.subr.bf16.mxu1 %v2299_v0 }
 0x2a3   : > { %1779 = vmatpush3.bf16.msra.mxu1 %v1988_v58 }
 0x2a4   : > { %1780 = vmatprep.subr.bf16.mxu1 %v2299_v0 }
 0x2a7   : > { %1781 = vmatpush3.bf16.msra.mxu1 %v1989_v59 }
 0x2a8   : > { %1782 = vmatprep.subr.bf16.mxu1 %v2299_v0 }
 0x2ab   : > { %1783 = vmatpush3.bf16.msra.mxu1 %v1990_v60 }
 0x2ac   : > { %1784 = vmatprep.subr.bf16.mxu1 %v2299_v0 }
 0x2af   : > { %1785 = vmatpush3.bf16.msra.mxu1 %v1991_v61 }
 0x2b0   : > { %1786 = vmatprep.subr.bf16.mxu1 %v2299_v0 }
 0x2b3   : > { %1787 = vmatpush3.bf16.msra.mxu1 %v1992_v62 }
 0x2b4   : > { %1788 = vmatprep.subr.bf16.mxu1 %v2299_v0 }
 0x2b7   : > { %1789 = vmatpush3.bf16.msra.mxu1 %v1993_v63 }
 0x2b8   : > { %1814 = vmatprep.subr.bf16.mxu1 %v2299_v0 }
 0x36d   : > { %v1048_v18 = vpop.f32.mrb[0].mxu1 }
 0x36e   : > { %v1049_v19 = vadd.f32 %v1048_v18, %v927_v16  ;;  %v1050_v20 = vpop.f32.mrb[1].mxu1 }
 0x36f   : > { %v1051_v21 = vadd.f32 %v1050_v20, %v931_v17  ;;  %v1052_v22 = vpop.f32.mrb[2].mxu1 }
 0x370   : > { %1444 = vst [vmem:[%s2734_s22 + $0x8] sm:$0xff] %v1049_v19  ;;  %v1053_v23 = vpop.f32.mrb[3].mxu1 }
 0x371   : > { %v1055_v24 = vmul.f32 0.5, %v1051_v21  ;;  %1445 = vst [vmem:[%s2734_s22 + $0x10] sm:$0xff] %v1051_v21 }
 0x373   : > { %v1056_v25 = vmul.f32 1.442695, %v1055_v24 }
 0x375   : > { %2010 = vpow2.f32 %v1056_v25 }
 0x37f   : > { %v2011_v27 = vpop.eup %2010 }
 0x380   : > { %v1058_v28 = vmul.f32 %v2011_v27, %v681_v26 }
 0x382   : > { %v1059_v29 = vadd.f32 %v1058_v28, %v1049_v19 }
 0x384   : > { %v1060_v30 = vpack.c.bf16 %v1059_v29, %v1059_v29 }
 0x386   : > { %1791 = vmatmul.mubr.bf16.vlgmr.msra.gmra.mrb[4].mxu1 %v1060_v30 }
 0x387   : > { %1830 = vmatprep.mubr.msk.bf16.mxu1 %vm2300_vm0, %v2299_v0  ;;  %1815 = vmatpush3.bf16.msra.mxu1 %v2002_v33 }
 0x388   : > { %1816 = vmatprep.subr.bf16.mxu1 %v2299_v0 }
 0x38b   : > { %1817 = vmatpush3.bf16.msra.mxu1 %v2003_v34 }
 0x38c   : > { %1818 = vmatprep.subr.bf16.mxu1 %v2299_v0 }
 0x38f   : > { %1819 = vmatpush3.bf16.msra.mxu1 %v2004_v35 }
 0x390   : > { %1820 = vmatprep.subr.bf16.mxu1 %v2299_v0 }
 0x393   : > { %1821 = vmatpush3.bf16.msra.mxu1 %v2005_v36 }
 0x394   : > { %1822 = vmatprep.subr.bf16.mxu1 %v2299_v0 }
 0x397   : > { %1823 = vmatpush3.bf16.msra.mxu1 %v2006_v37 }
 0x398   : > { %1824 = vmatprep.subr.bf16.mxu1 %v2299_v0 }
 0x39b   : > { %1825 = vmatpush3.bf16.msra.mxu1 %v2007_v38 }
 0x39c   : > { %1826 = vmatprep.subr.bf16.mxu1 %v2299_v0 }
 0x39f   : > { %1827 = vmatpush3.bf16.msra.mxu1 %v2008_v48 }
 0x3a0   : > { %1828 = vmatprep.subr.bf16.mxu1 %v2299_v0  ;;  %v1682_v0 = vld [vmem:[%s2874_s17] ss:$0 sm:$0xff] }
 0x3a3   : > { %1829 = vmatpush3.bf16.msra.mxu1 %v2009_v49 }
 0x459   : > { %v1203_v39 = vpop.f32.mrb[4].mxu1 }
 0x45a   : > { %v1204_v41 = vadd.f32 %v1203_v39, %v2720_v2  ;;  %v1792_v42 = vpop.f32.mrb[5].mxu1 }
 0x45b   : > { %v1206_v43 = vpop.f32.mrb[6].mxu1 }
 0x45c   : > { %v1216_v44 = vadd.f32 %v1672_v40, %v1204_v41  ;;  %v1793_v45 = vpop.f32.mrb[7].mxu1 }
 0x45e   : > { %v1217_v46 = vmax.f32 %v1216_v44, 0.0 }
 0x460   : > { %v1218_v47 = vpack.c.bf16 %v1217_v46, %v1217_v46 }
 0x462   : > { %1811 = vmatmul.mubr.bf16.vlgmr.msra.gmra.mrb[16].mxu0 %v1218_v47 }
 0x535   : > { %v1324_v51 = vpop.f32.mrb[16].mxu0 }
 0x536   : > { %v1325_v52 = vadd.f32 %v1673_v50, %v1324_v51  ;;  %v1812_v53 = vpop.f32.mrb[17].mxu0 }
 0x537   : > { %v1327_v54 = vpop.f32.mrb[18].mxu0 }
 0x538   : > { %v1330_v55 = vmax.f32 %v1325_v52, 0.0  ;;  %v1813_v56 = vpop.f32.mrb[19].mxu0 }
 0x53a   : > { %v1331_v57 = vpack.c.bf16 %v1330_v55, %v1330_v55 }
 0x53c   : > { %1831 = vmatmul.mubr.bf16.vlgmr.msra.gmra.mrb[8].mxu1 %v1331_v57 }
 0x60f   : > { %v1437_v58 = vpop.f32.mrb[8].mxu1 }
 0x610   : > { %v1438_v59 = vadd.f32 %v1682_v0, %v1437_v58  ;;  %v1832_v60 = vpop.f32.mrb[9].mxu1 }
 0x611   : > { %v1440_v61 = vpop.f32.mrb[10].mxu1 }
 0x612   : > { %1443 = vst [vmem:[%s2734_s22] sm:$0xff] %v1438_v59  ;;  %v1833_v62 = vpop.f32.mrb[11].mxu1 }
 0x613   : > { %2221 = shalt.err (!%p2218_p6)
}
 0x614   : > { %s2222_s29 = scalar_lea.hbm %s2767_s24, 384  ;;  %s2226_s26 = scalar_lea.hbm %s2875_s1, 1152 }
 0x615   : > { %p2223_p5 = scmp.ne.s32.totalorder %s2767_s24, %s2222_s29  ;;  %p2227_p10 = scmp.lt.u32.totalorder %s2767_s24, %s2875_s1 }
 0x616   : > { %p2228_p2 = scmp.lt.u32.totalorder %s2226_s26, %s2222_s29  ;;  %p2230_p4 = scmp.lt.u32.totalorder %s2222_s29, %s2767_s24 }
 0x617   : > { %p2224_p9 = pnand %p2223_p5, %p2876_p7 }
 0x618   : > { %p2229_p3 = por %p2228_p2, %p2227_p10 }
 0x619   : > { %p2225_p12 = pneg %p2224_p9 }
 0x61a   : > { %p2231_p8 = por %p2230_p4, %p2229_p3 }
 0x61c   : > { %p2232_p11 = pnand %p2231_p8, %p2225_p12 }
 0x61e   : > { %2235 = shalt.err (!%p2232_p11)
}
 0x61f   : > { %1864 = dma.vmem_to_hbm [thread:$0]  (%p2876_p7), %s2769_s27, 384, %s2767_s24, %s1447_s28  }
 0x620 PF: > { %s2877_s17 = sld [smem:[#allocation22_spill]]  ;;  %s2878_s21 = sld [smem:[#allocation20_spill]] }
 0x621   : > { %s2879_s14 = sld [smem:[#allocation26_spill]] }
 0x626   : > { %p1906_p13 = scmp.ge.s32.totalorder %s2877_s17, 2  ;;  %s1473_s18 = sand.u32 1, %s2878_s21  }
 0x627   : > { %p2880_p0 = scmp.ne.s32.totalorder %s2879_s14, 0  ;;  %s1474_s23 = scalar_lea.sflag [#allocation4], %s1473_s18 }
 0x629   : > { %p1889_p1 = pnand %p1906_p13, %p2880_p0 }
 0x62b   : > { %2269 = dma.done.wait (!%p1889_p1), %s1474_s23, 384  }
 0x62c   : > { %2271 = vsyncadd (!%p1889_p1), %s1474_s23, 4294966912  ;;  %s2881_s27 = sld [smem:[#allocation23_spill]]  ;;  %s2882_s19 = sld [smem:[#allocation21_spill]] }
 0x62d   : > { %s2883_s26 = sld [smem:[#allocation24_spill]]  ;;  %s2884_s24 = smov %s2278_s25 }
 0x632   : > { %p31_p6 = scmp.ge.s32.totalorder %s2881_s27, 5   ;;  %s2885_s25 = smov %s2882_s19 }
 0x634   :  { %33 = sbr.rel (!%p31_p6) target bundleno = 14 (0xe), region = 158 }
 0x63b   :  { %1479 = vsyncpa [#allocation3], 1 }
 0x63c   :  { %1481 = vsyncpa [#allocation3 + $0x1], 1 }
 0x63d   :  { %1482 = vsyncpa [#allocation6], 1 }
 0x63e   :  { %1483 = vsyncpa [#allocation9], 1 }
 0x63f   :  { %1484 = vsyncpa [#allocation12], 1 }
 0x640   :  { %1485 = vsyncpa [#allocation4], 1 }
 0x641   :  { %1487 = vsyncpa [#allocation4 + $0x1], 1 }

// kernel: tpu_custom_call.1
= control target key start
LH: loop header
LB: loop body
LE: loop exit
PB: predicated region body
PF: predicated region fallthrough
CT: control target
= control target key end

     0   :  { %s2812_s0 = inlined_call_operand.vmem [shape: f32[24,16], index: 0, kind: input, shape index: {}]   ;;  %s2813_s1 = inlined_call_operand.vmem [shape: f32[24,4], index: 1, kind: input, shape index: {}]   ;;  %s2814_s2 = inlined_call_operand.vmem [shape: f32[24,128], index: 2, kind: input, shape index: {}]   ;;  %s2815_s3 = inlined_call_operand.hbm [shape: bf16[16,128], index: 3, kind: input, shape index: {}]   ;;  %s2816_s4 = inlined_call_operand.vmem [shape: bf16[4,128], index: 4, kind: input, shape index: {}]   ;;  %s2817_s5 = inlined_call_operand.hbm [shape: f32[1,128], index: 5, kind: input, shape index: {}]   ;;  %s2818_s6 = inlined_call_operand.vmem [shape: bf16[128,128], index: 6, kind: input, shape index: {}]   ;;  %s2819_s7 = inlined_call_operand.hbm [shape: f32[1,128], index: 7, kind: input, shape index: {}]   ;;  %s2820_s8 = inlined_call_operand.hbm [shape: bf16[128,256], index: 8, kind: input, shape index: {}]   ;;  %s2821_s9 = inlined_call_operand.vmem [shape: f32[1,256], index: 9, kind: input, shape index: {}]   ;;  %s2822_s10 = inlined_call_operand.hbm [shape: bf16[128,128], index: 10, kind: input, shape index: {}]   ;;  %s2823_s11 = inlined_call_operand.vmem [shape: bf16[4,128], index: 11, kind: input, shape index: {}]   ;;  %s2824_s12 = inlined_call_operand.vmem [shape: f32[1,128], index: 12, kind: input, shape index: {}]   ;;  %s2825_s13 = inlined_call_operand.hbm [shape: bf16[128,128], index: 13, kind: input, shape index: {}]   ;;  %s2826_s14 = inlined_call_operand.vmem [shape: f32[1,128], index: 14, kind: input, shape index: {}]   ;;  %s2827_s15 = inlined_call_operand.hbm [shape: bf16[128,128], index: 15, kind: input, shape index: {}]   ;;  %s2828_s16 = inlined_call_operand.vmem [shape: f32[1,128], index: 16, kind: input, shape index: {}]   ;;  %s2829_s17 = inlined_call_operand.hbm [shape: f32[24,384], index: 17, kind: output, shape index: {}]  }
   0x1   :  { %2842 = sst [smem:[#allocation27_spill]] %s2812_s0 }
   0x2   :  { %2843 = sst [smem:[#allocation28_spill]] %s2813_s1 }
   0x3   :  { %2844 = sst [smem:[#allocation29_spill]] %s2817_s5 }
   0x4   :  { %2845 = sst [smem:[#allocation30_spill]] %s2826_s14 }
   0x5   :  { %2846 = sst [smem:[#allocation31_spill]] %s2828_s16 }
   0x6   :  { %2847 = sst [smem:[#allocation32_spill]] %s2829_s17 }
   0x7   :  { %22 = vsyncpa [#allocation3], 0 }
   0x8   :  { %23 = vsyncpa [#allocation6], 0 }
   0x9   :  { %24 = vsyncpa [#allocation9], 0 }
   0xa   :  { %25 = vsyncpa [#allocation12], 0 }
   0xb   :  { %26 = vsyncpa [#allocation4], 0 }
   0xc   :  { %28 = vsyncpa [#allocation4 + $0x1], 0  ;;  %s2393_s24 = smov 0   ;;  %s2395_s25 = smov 0  }
   0xd   :  { %s2397_s26 = smov 0   ;;  %s2399_s27 = smov 0  }
   0xe LB: > { %2848 = sst [smem:[#allocation20_spill]] %s2274_s24  ;;  %s2414_s28 = sadd.s32 4294967295, %s2286_s27   ;;  %s2286_s27 = sphi %s2399_s27, %s2881_s27   ;;  %s2282_s26 = sphi %s2397_s26, %s2883_s26   ;;  %s2278_s25 = sphi %s2395_s25, %s2885_s25   ;;  %s2274_s24 = sphi %s2393_s24, %s2884_s24  }
   0xf   : > { %2849 = sst [smem:[#allocation21_spill]] %s2282_s26  ;;  %s1613_s29 = sadd.s32 4294967294, %s2286_s27  }
  0x10   : > { %2850 = sst [smem:[#allocation22_spill]] %s2286_s27  ;;  %s2418_s0 = sadd.s32 1, %s2286_s27  }
  0x11   : > { %2851 = sst [smem:[#allocation23_spill]] %s2418_s0  ;;  %s413_s30 = sadd.s32 1, %s2282_s26 }
  0x12   : > { %s410_s18 = ssub.s32 %s2286_s27, %s2418_s0  ;;  %p423_p0 = scmp.ne.s32.totalorder %s2282_s26, %s2278_s25 }
  0x13   : > { %p411_p1 = scmp.eq.s32.totalorder %s410_s18, 0  ;;  %p424_p2 = scmp.eq.s32.totalorder %s2414_s28, 2 }
  0x14   : > { %p429_p3 = scmp.ne.s32.totalorder %s2278_s25, %s2274_s24  ;;  %p430_p4 = scmp.eq.s32.totalorder %s1613_s29, 2 }
  0x15   : > { %s2429_s19 = scalar_select %p411_p1, %s2282_s26, %s413_s30  }
  0x16   : > { %p2431_p5 = por %p424_p2, %p423_p0  ;;  %p2435_p6 = por %p430_p4, %p429_p3 }
  0x17   : > { %2852 = sst [smem:[#allocation24_spill]] %s2429_s19  ;;  %p1614_p7 = scmp.ge.s32.totalorder %s2286_s27, 1 }
  0x18   : > { %s2853_s1 = scalar_select %p2431_p5, 1, 0 }
  0x19   : > { %s2855_s20 = scalar_select %p2435_p6, 1, 0 }
  0x1a   : > { %2854 = sst [smem:[#allocation25_spill]] %s2853_s1  ;;  %p437_p8 = scmp.lt.s32.totalorder %s2286_s27, 4 }
  0x1b   : > { %2856 = sst [smem:[#allocation26_spill]] %s2855_s20  ;;  %p2836_p9 = scmp.eq.s32.totalorder %s2414_s28, 0 }
  0x1c   : > { %p2442_p10 = pnand %p1614_p7, %p437_p8  ;;  %s2288_s22 = smov [#allocation5]  }
  0x1d   : > { %s466_s23 = sshll.u32 %s2288_s22, 4  ;;  %s2289_s29 = smov [#allocation8]   ;;  %s467_s23 = int_to_ptr.vmem [resolvable:$true] %s466_s23 }
  0x1e   : > { %s2857_s21 = scalar_select %p2442_p10, 1, 0 }
  0x1f   : > { %p1866_p11 = pneg %p2442_p10  ;;  %s490_s30 = sshll.u32 %s2289_s29, 4  ;;  %s2454_s30 = int_to_ptr.vmem [resolvable:$true] %s490_s30 }
  0x20   : > { %s2859_s5 = sld [smem:[#allocation29_spill]] }
  0x21   : > { %p2450_p12 = pnand %p2836_p9, %p1866_p11 }
  0x23   : > { %p2464_p0 = pneg %p2450_p12 }
  0x26   : > { %s2012_s0 = scalar_lea.hbm %s2859_s5, 16 }
  0x27   : > { %p2013_p13 = scmp.ne.s32.totalorder %s2859_s5, %s2012_s0  ;;  %p2019_p3 = scmp.lt.u32.totalorder %s2012_s0, %s2859_s5 }
  0x29   : > { %p2015_p1 = pnand %p2464_p0, %p2013_p13 }
  0x2b   : > { %p2016_p2 = pneg %p2015_p1 }
  0x2d   : > { %p2021_p4 = pnand %p2019_p3, %p2016_p2 }
  0x2f   : > { %2024 = shalt.err (!%p2021_p4)
}
  0x30   : > { %s2025_s26 = scalar_lea.vmem %s467_s23, 16  ;;  %s2032_s24 = scalar_lea.vmem %s467_s23, 32 }
  0x31   : > { %p2026_p7 = scmp.ne.s32.totalorder %s467_s23, %s2025_s26  ;;  %p2033_p9 = scmp.lt.s32.totalorder %s467_s23, %s467_s23 }
  0x32   : > { %p2034_p6 = scmp.lt.s32.totalorder %s2032_s24, %s2025_s26 }
  0x33   : > { %p2028_p8 = pnand %p2026_p7, %p2464_p0 }
  0x34   : > { %p2035_p5 = por %p2034_p6, %p2033_p9 }
  0x35   : > { %p2029_p11 = pneg %p2028_p8 }
  0x37   : > { %p2036_p10 = pnand %p2035_p5, %p2029_p11 }
  0x39   : > { %2039 = shalt.err (!%p2036_p10)
}
  0x3a   : > { %1872 = dma.hbm_to_vmem [thread:$0]  (!%p2450_p12), %s2859_s5, 16, %s467_s23, [#allocation6]  }
  0x3b   : > { %s2040_s29 = scalar_lea.hbm %s2820_s8, 2048 }
  0x3c   : > { %p2041_p13 = scmp.ne.s32.totalorder %s2820_s8, %s2040_s29  ;;  %p2047_p5 = scmp.lt.u32.totalorder %s2040_s29, %s2820_s8 }
  0x3e   : > { %p2043_p1 = pnand %p2041_p13, %p2464_p0 }
  0x40   : > { %p2044_p6 = pneg %p2043_p1 }
  0x42   : > { %p2049_p9 = pnand %p2047_p5, %p2044_p6 }
  0x44   : > { %2052 = shalt.err (!%p2049_p9)
}
  0x45   : > { %s2053_s23 = scalar_lea.vmem %s2454_s30, 2048  ;;  %p2061_p4 = scmp.lt.s32.totalorder %s2454_s30, %s2454_s30 }
  0x46   : > { %p2054_p10 = scmp.ne.s32.totalorder %s2454_s30, %s2053_s23  ;;  %p2062_p7 = scmp.lt.s32.totalorder %s2053_s23, %s2053_s23 }
  0x48   : > { %p2056_p2 = pnand %p2054_p10, %p2464_p0  ;;  %p2063_p8 = por %p2062_p7, %p2061_p4 }
  0x4a   : > { %p2057_p3 = pneg %p2056_p2 }
  0x4c   : > { %p2064_p11 = pnand %p2063_p8, %p2057_p3 }
  0x4e   : > { %2067 = shalt.err (!%p2064_p11)
}
  0x4f   : > { %s2290_s16 = smov 128   ;;  %s2291_s17 = smov 8  }
  0x50   : > { %1878 = dma.hbm_to_vmem [thread:$0]  (!%p2450_p12), %s2820_s8, 2048, %s2454_s30, [#allocation9], %s2290_s16, %s2290_s16, %s2291_s17  }
  0x51   : > { %s2292_s27 = smov [#allocation11]   ;;  %s2293_s29 = smov [#allocation2]  }
  0x52   : > { %s525_s0 = sshll.u32 %s2292_s27, 4  ;;  %s449_s26 = sshll.u32 %s2293_s29, 4  ;;  %s526_s0 = int_to_ptr.vmem [resolvable:$true] %s525_s0  ;;  %s2503_s26 = int_to_ptr.vmem [resolvable:$true] %s449_s26 }
  0x53   : > { %s2068_s5 = scalar_lea.hbm %s2825_s13, 1024 }
  0x54   : > { %p2069_p13 = scmp.ne.s32.totalorder %s2825_s13, %s2068_s5  ;;  %p2075_p5 = scmp.lt.u32.totalorder %s2068_s5, %s2825_s13 }
  0x56   : > { %p2071_p1 = pnand %p2069_p13, %p2464_p0 }
  0x58   : > { %p2072_p6 = pneg %p2071_p1 }
  0x5a   : > { %p2077_p9 = pnand %p2075_p5, %p2072_p6 }
  0x5c   : > { %2080 = shalt.err (!%p2077_p9)
}
  0x5d   : > { %s2081_s16 = scalar_lea.vmem %s526_s0, 1024  ;;  %p2089_p4 = scmp.lt.s32.totalorder %s526_s0, %s526_s0 }
  0x5e   : > { %p2082_p10 = scmp.ne.s32.totalorder %s526_s0, %s2081_s16  ;;  %p2090_p7 = scmp.lt.s32.totalorder %s2081_s16, %s2081_s16 }
  0x60   : > { %p2084_p2 = pnand %p2082_p10, %p2464_p0  ;;  %p2091_p8 = por %p2090_p7, %p2089_p4 }
  0x62   : > { %p2085_p3 = pneg %p2084_p2 }
  0x64   : > { %p2092_p11 = pnand %p2091_p8, %p2085_p3 }
  0x66   : > { %2095 = shalt.err (!%p2092_p11)
}
  0x67   : > { %s2294_s14 = smov 64   ;;  %s2295_s1 = smov 4  }
  0x68   : > { %1884 = dma.hbm_to_vmem [thread:$0]  (!%p2450_p12), %s2825_s13, 1024, %s526_s0, [#allocation12], %s2294_s14, %s2294_s14, %s2295_s1  }
  0x69   : > { %s2096_s29 = scalar_lea.hbm %s2815_s3, 128 }
  0x6a   : > { %p2097_p13 = scmp.ne.s32.totalorder %s2815_s3, %s2096_s29  ;;  %p2103_p5 = scmp.lt.u32.totalorder %s2096_s29, %s2815_s3 }
  0x6c   : > { %p2099_p1 = pnand %p2097_p13, %p2464_p0 }
  0x6e   : > { %p2100_p6 = pneg %p2099_p1 }
  0x70   : > { %p2105_p9 = pnand %p2103_p5, %p2100_p6 }
  0x72   : > { %2108 = shalt.err (!%p2105_p9)
}
  0x73   : > { %s2109_s0 = scalar_lea.vmem %s2503_s26, 128  ;;  %p2117_p4 = scmp.lt.s32.totalorder %s2503_s26, %s2503_s26 }
  0x74   : > { %p2110_p10 = scmp.ne.s32.totalorder %s2503_s26, %s2109_s0  ;;  %p2118_p7 = scmp.lt.s32.totalorder %s2109_s0, %s2109_s0 }
  0x76   : > { %p2112_p2 = pnand %p2110_p10, %p2464_p0  ;;  %p2119_p8 = por %p2118_p7, %p2117_p4 }
  0x78   : > { %p2113_p3 = pneg %p2112_p2 }
  0x7a   : > { %p2120_p11 = pnand %p2119_p8, %p2113_p3 }
  0x7c   : > { %2123 = shalt.err (!%p2120_p11)
}
  0x7d   : > { %1869 = dma.hbm_to_vmem [thread:$0]  (!%p2450_p12), %s2815_s3, 128, %s2503_s26, [#allocation3], %s2294_s14, %s2294_s14, %s2295_s1  }
  0x7e   : > { %s2296_s17 = smov [#allocation7]   ;;  %s2297_s27 = smov [#allocation10]  }
  0x7f   : > { %s480_s20 = sshll.u32 %s2296_s17, 4  ;;  %s506_s29 = sshll.u32 %s2297_s27, 4  ;;  %s481_s20 = int_to_ptr.vmem [resolvable:$true] %s480_s20  ;;  %s2552_s29 = int_to_ptr.vmem [resolvable:$true] %s506_s29 }
  0x80   : > { %s2124_s19 = scalar_lea.hbm %s2819_s7, 16 }
  0x81   : > { %p2125_p13 = scmp.ne.s32.totalorder %s2819_s7, %s2124_s19  ;;  %p2131_p5 = scmp.lt.u32.totalorder %s2124_s19, %s2819_s7 }
  0x83   : > { %p2127_p1 = pnand %p2125_p13, %p2464_p0 }
  0x85   : > { %p2128_p6 = pneg %p2127_p1 }
  0x87   : > { %p2133_p9 = pnand %p2131_p5, %p2128_p6 }
  0x89   : > { %2136 = shalt.err (!%p2133_p9)
}
  0x8a   : > { %s2137_s5 = scalar_lea.vmem %s481_s20, 16  ;;  %s2144_s17 = scalar_lea.vmem %s481_s20, 32 }
  0x8b   : > { %p2138_p10 = scmp.ne.s32.totalorder %s481_s20, %s2137_s5  ;;  %p2145_p4 = scmp.lt.s32.totalorder %s481_s20, %s481_s20 }
  0x8c   : > { %p2146_p7 = scmp.lt.s32.totalorder %s2144_s17, %s2137_s5 }
  0x8d   : > { %p2140_p2 = pnand %p2138_p10, %p2464_p0 }
  0x8e   : > { %p2147_p8 = por %p2146_p7, %p2145_p4 }
  0x8f   : > { %p2141_p3 = pneg %p2140_p2 }
  0x91   : > { %p2148_p11 = pnand %p2147_p8, %p2141_p3 }
  0x93   : > { %2151 = shalt.err (!%p2148_p11)
}
  0x94   : > { %1875 = dma.hbm_to_vmem [thread:$0]  (!%p2450_p12), %s2819_s7, 16, %s481_s20, [#allocation6]  }
  0x95   : > { %s2152_s30 = scalar_lea.hbm %s2822_s10, 1024 }
  0x96   : > { %p2153_p13 = scmp.ne.s32.totalorder %s2822_s10, %s2152_s30  ;;  %p2159_p5 = scmp.lt.u32.totalorder %s2152_s30, %s2822_s10 }
  0x98   : > { %p2155_p1 = pnand %p2153_p13, %p2464_p0 }
  0x9a   : > { %p2156_p6 = pneg %p2155_p1 }
  0x9c   : > { %p2161_p9 = pnand %p2159_p5, %p2156_p6 }
  0x9e   : > { %2164 = shalt.err (!%p2161_p9)
}
  0x9f   : > { %s2165_s20 = scalar_lea.vmem %s2552_s29, 1024  ;;  %p2173_p4 = scmp.lt.s32.totalorder %s2552_s29, %s2552_s29 }
  0xa0   : > { %p2166_p10 = scmp.ne.s32.totalorder %s2552_s29, %s2165_s20  ;;  %p2174_p7 = scmp.lt.s32.totalorder %s2165_s20, %s2165_s20 }
  0xa2   : > { %p2168_p2 = pnand %p2166_p10, %p2464_p0  ;;  %p2175_p8 = por %p2174_p7, %p2173_p4 }
  0xa4   : > { %p2169_p3 = pneg %p2168_p2 }
  0xa6   : > { %p2176_p11 = pnand %p2175_p8, %p2169_p3 }
  0xa8   : > { %2179 = shalt.err (!%p2176_p11)
}
  0xa9   : > { %1881 = dma.hbm_to_vmem [thread:$0]  (!%p2450_p12), %s2822_s10, 1024, %s2552_s29, [#allocation9], %s2294_s14, %s2294_s14, %s2295_s1  }
  0xaa   : > { %s2298_s24 = smov [#allocation13]   ;;  %s2180_s0 = scalar_lea.hbm %s2827_s15, 1024 }
  0xab   : > { %s541_s23 = sshll.u32 %s2298_s24, 4  ;;  %p2181_p13 = scmp.ne.s32.totalorder %s2827_s15, %s2180_s0  ;;  %s542_s23 = int_to_ptr.vmem [resolvable:$true] %s541_s23 }
  0xac   : > { %p2187_p5 = scmp.lt.u32.totalorder %s2180_s0, %s2827_s15 }
  0xad   : > { %p2183_p1 = pnand %p2181_p13, %p2464_p0 }
  0xaf   : > { %p2184_p6 = pneg %p2183_p1 }
  0xb1   : > { %p2189_p9 = pnand %p2187_p5, %p2184_p6 }
  0xb3   : > { %2192 = shalt.err (!%p2189_p9)
}
  0xb4   : > { %s2193_s29 = scalar_lea.vmem %s542_s23, 1024  ;;  %p2201_p4 = scmp.lt.s32.totalorder %s542_s23, %s542_s23 }
  0xb5   : > { %p2194_p10 = scmp.ne.s32.totalorder %s542_s23, %s2193_s29  ;;  %p2202_p7 = scmp.lt.s32.totalorder %s2193_s29, %s2193_s29 }
  0xb7   : > { %p2196_p2 = pnand %p2194_p10, %p2464_p0  ;;  %p2203_p8 = por %p2202_p7, %p2201_p4 }
  0xb9   : > { %p2197_p3 = pneg %p2196_p2 }
  0xbb   : > { %p2204_p11 = pnand %p2203_p8, %p2197_p3 }
  0xbd   : > { %2207 = shalt.err (!%p2204_p11)
}
  0xbe   : > { %1887 = dma.hbm_to_vmem [thread:$0]  (!%p2450_p12), %s2827_s15, 1024, %s542_s23, [#allocation12], %s2294_s14, %s2294_s14, %s2295_s1  }
  0xbf   : > { %p2861_p13 = scmp.ne.s32.totalorder %s2857_s21, 0 }
  0xc0   : > { %p2862_p0 = scmp.eq.s32.totalorder (!%p2861_p13), %s2414_s28, 0 }
  0xc1   : > { %581 = sbr.rel (%p2861_p13) target bundleno = 1568 (0x620), region = 88 }
  0xc8   : > { %2253 = dma.done.wait (%p2862_p0), [#allocation3], 128   ;;  %p2863_p1 = pmov %p2862_p0 }
  0xc9   : > { %p2864_p6 = pmov %p2862_p0 }
  0xca   : > { %2255 = vsyncadd (%p2863_p1), [#allocation3], 4294967168 }
  0xcb   : > { %2257 = dma.done.wait (%p2864_p6), [#allocation6], 32   ;;  %p2865_p5 = pmov %p2862_p0 }
  0xcc   : > { %p2866_p9 = pmov %p2862_p0 }
  0xcd   : > { %2259 = vsyncadd (%p2865_p5), [#allocation6], 4294967264 }
  0xce   : > { %2261 = dma.done.wait (%p2866_p9), [#allocation9], 3072   ;;  %p2867_p12 = pmov %p2862_p0 }
  0xcf   : > { %p2868_p10 = pmov %p2862_p0 }
  0xd0   : > { %2263 = vsyncadd (%p2867_p12), [#allocation9], 4294964224 }
  0xd1   : > { %2265 = dma.done.wait (%p2868_p10), [#allocation12], 2048   ;;  %p2869_p2 = pmov %p2862_p0 }
  0xd2   : > { %p664_p3 = scmp.lt.s32.totalorder %s2414_s28, 2  ;;  %v2299_v0 = vmov 0.0   ;;  %vm2300_vm0 = vmmov 0   ;;  %vm689_vm1 = vcmask 1041408   ;;  %s2870_s1 = sld [smem:[#allocation28_spill]]  ;;  %vm685_vm2 = vcmask 31744  }
  0xd3   : > { %2267 = vsyncadd (%p2869_p2), [#allocation12], 4294965248  ;;  %1736 = vmatprep.subr.bf16.mxu0 %v2299_v0  ;;  %1738 = vmatprep.mubr.msk.bf16.mxu0 %vm2300_vm0, %v2299_v0  ;;  %v684_v1 = vld [vmem:[%s2816_s4] sm:$0x3]  ;;  %v1953_v5 = vld [vmem:[#allocation2] sm:$0xff]   ;;  %s2871_s16 = sld [smem:[#allocation27_spill]] }
  0xd4   : > { %s665_s21 = scalar_select %p664_p3, %s2414_s28, 2  ;;  %v691_v3 = vsel %vm689_vm1, %v684_v1, 0  ;;  %v1954_v7 = vld [vmem:[%s2818_s6] sm:$0xff]   ;;  %vm739_vm3 = vcmask 130048   ;;  %v1955_v9 = vld [vmem:[%s2818_s6 + $0x8] sm:$0xff]   ;;  %v1956_v10 = vld [vmem:[%s2818_s6 + $0x10] sm:$0xff]  }
  0xd5   : > { %1737 = vmatpush3.bf16.msra.mxu0 %v691_v3  ;;  %v1957_v11 = vld [vmem:[%s2818_s6 + $0x18] sm:$0xff]   ;;  %v1958_v12 = vld [vmem:[%s2818_s6 + $0x20] sm:$0xff]   ;;  %v1959_v13 = vld [vmem:[%s2818_s6 + $0x28] sm:$0xff]   ;;  %v2301_v47 = vmov 0   ;;  %s661_s29 = sand.u32 1, %s2278_s25   ;;  %s2872_s0 = sld [smem:[#allocation30_spill]] }
  0xd6   : > { %s2642_s18 = sshll.u32 %s665_s21, 3  ;;  %1742 = vmatprep.subr.bf16.mxu0 %v2299_v0  ;;  %v1960_v14 = vld [vmem:[%s2818_s6 + $0x30] sm:$0xff]   ;;  %v1961_v15 = vld [vmem:[%s2818_s6 + $0x38] sm:$0xff]   ;;  %v1964_v17 = vld [vmem:[#allocation8] ss:$8 sps:$4 sm:$0xff]   ;;  %1046 = vmatprep.mubr.bf16.mxu1 %v2301_v47  ;;  %s1834_s21 = smul.u32 24, %s661_s29 }
  0xd7   : > { %v1962_v16 = vld [vmem:[#allocation8 + $0x4] ss:$8 sps:$4 sm:$0xff]   ;;  %v1965_v18 = vld [vmem:[#allocation8 + $0x14] ss:$8 sps:$4 sm:$0xff]   ;;  %v1967_v19 = vld [vmem:[#allocation8 + $0x10] ss:$8 sps:$4 sm:$0xff]  }
  0xd8   : > { %s671_s24 = scalar_lea.vmem %s2870_s1, %s2642_s18  ;;  %1014 = vmatprep.subr.bf16.mxu1 %v1962_v16  ;;  %v1968_v20 = vld [vmem:[#allocation8 + $0x24] ss:$8 sps:$4 sm:$0xff]   ;;  %v1970_v21 = vld [vmem:[#allocation8 + $0x20] ss:$8 sps:$4 sm:$0xff]   ;;  %v1971_v22 = vld [vmem:[#allocation8 + $0x34] ss:$8 sps:$4 sm:$0xff]  }
  0xd9   : > { %v679_v2 = vld [vmem:[%s671_s24] sm:$0xff]  ;;  %s667_s26 = scalar_lea.vmem %s2871_s16, %s2642_s18  ;;  %1015 = vmatpush1.bf16.msra.mxu1 %v1964_v17  ;;  %v1973_v23 = vld [vmem:[#allocation8 + $0x30] ss:$8 sps:$4 sm:$0xff]   ;;  %v1974_v24 = vld [vmem:[#allocation8 + $0x44] ss:$8 sps:$4 sm:$0xff]   ;;  %s2734_s22 = scalar_lea.vmem [#allocation14], %s1834_s21 }
  0xda   : > { %v2652_v4 = vpack.c.bf16 %v679_v2, %v679_v2  ;;  %v677_v6 = vld [vmem:[%s667_s26] sm:$0xff]  ;;  %1016 = vmatprep.subr.bf16.mxu1 %v1965_v18  ;;  %v1979_v27 = vld [vmem:[#allocation8 + $0x50] ss:$8 sps:$4 sm:$0xff]   ;;  %v1980_v28 = vld [vmem:[#allocation8 + $0x64] ss:$8 sps:$4 sm:$0xff]   ;;  %s675_s24 = scalar_lea.vmem %s2814_s2, %s2642_s18  ;;  %s2873_s16 = sld [smem:[#allocation25_spill]] }
  0xdb   : > { %v678_v8 = vpack.c.bf16 %v677_v6, %v677_v6  ;;  %v1976_v25 = vld [vmem:[#allocation8 + $0x40] ss:$8 sps:$4 sm:$0xff]   ;;  %v1977_v26 = vld [vmem:[#allocation8 + $0x54] ss:$8 sps:$4 sm:$0xff]   ;;  %v1985_v46 = vld [vmem:[#allocation8 + $0x70] ss:$8 sps:$4 sm:$0xff]  }
  0xdc   : > { %1739 = vmatmul.mubr.msk.bf16.vlgmr.msra.gmra.mrb[0].mxu0 %vm685_vm2, %v2652_v4  ;;  %v1637_v34 = vld [vmem:[#allocation5] ss:$0 sm:$0xff]  ;;  %v1982_v44 = vld [vmem:[#allocation8 + $0x60] ss:$8 sps:$4 sm:$0xff]   ;;  %v1638_v48 = vld [vmem:[#allocation7] ss:$0 sm:$0xff] }
  0xdd   : > { %1743 = vmatpush3.bf16.msra.mxu0 %v1953_v5  ;;  %1744 = vmatprep.mubr.msk.bf16.mxu0 %vm2300_vm0, %v2299_v0  ;;  %v1077_v40 = vld [vmem:[%s2823_s11] sm:$0x3]  ;;  %v1986_v55 = vld [vmem:[#allocation10] sm:$0xff]   ;;  %v1987_v57 = vld [vmem:[#allocation10 + $0x8] sm:$0xff]   ;;  %s1835_s26 = smul.u32 384, %s2414_s28  ;;  %s2874_s17 = sld [smem:[#allocation31_spill]] }
  0xde   : > { %1748 = vmatprep.subr.bf16.mxu0 %v2299_v0  ;;  %1017 = vmatpush1.bf16.msra.mxu1 %v1967_v19  ;;  %v1079_v42 = vsel %vm689_vm1, %v1077_v40, 0  ;;  %v1983_v45 = vld [vmem:[#allocation8 + $0x74] ss:$8 sps:$4 sm:$0xff]   ;;  %v1990_v60 = vld [vmem:[#allocation10 + $0x20] sm:$0xff]   ;;  %v1991_v61 = vld [vmem:[#allocation10 + $0x28] sm:$0xff]   ;;  %s1461_s27 = sshll.u32 %s2734_s22, 4  ;;  %s2769_s27 = int_to_ptr.vmem [resolvable:$true] %s1461_s27 }
  0xdf   : > { %1018 = vmatprep.subr.bf16.mxu1 %v1968_v20  ;;  %v1988_v58 = vld [vmem:[#allocation10 + $0x10] sm:$0xff]   ;;  %v1989_v59 = vld [vmem:[#allocation10 + $0x18] sm:$0xff]   ;;  %v1994_v1 = vld [vmem:[#allocation11] sm:$0xff]   ;;  %s2875_s1 = sld [smem:[#allocation32_spill]]  ;;  %s1447_s28 = scalar_lea.sflag [#allocation4], %s661_s29 }
  0xe0   : > { %v1992_v62 = vld [vmem:[#allocation10 + $0x30] sm:$0xff]   ;;  %v1993_v63 = vld [vmem:[#allocation10 + $0x38] sm:$0xff]   ;;  %s2208_s18 = scalar_lea.vmem %s2769_s27, 384  ;;  %p2876_p7 = scmp.ne.s32.totalorder %s2873_s16, 0 }
  0xe1   : > { %v1672_v40 = vld [vmem:[%s2824_s12] ss:$0 sm:$0xff]  ;;  %p2209_p4 = scmp.ne.s32.totalorder %s2769_s27, %s2208_s18  ;;  %s2302_s23 = smov [#allocation14]  }
  0xe2   : > { %1019 = vmatpush1.bf16.msra.mxu1 %v1970_v21  ;;  %s2212_s19 = sshll.u32 %s2302_s23, 4  ;;  %s2213_s19 = int_to_ptr.vmem [resolvable:$false] %s2212_s19 }
  0xe3   : > { %1020 = vmatprep.subr.bf16.mxu1 %v1971_v22  ;;  %p2210_p8 = pnand %p2209_p4, %p2876_p7  ;;  %s2214_s30 = scalar_lea.vmem %s2213_s19, 768 }
  0xe4   : > { %1745 = vmatmul.mubr.msk.bf16.vlgmr.msra.gmra.mrb[4].mxu0 %vm739_vm3, %v678_v8  ;;  %v1997_v8 = vld [vmem:[#allocation11 + $0x18] sm:$0xff]   ;;  %p2215_p13 = scmp.lt.s32.totalorder %s2769_s27, %s2213_s19  ;;  %p2216_p0 = scmp.lt.s32.totalorder %s2214_s30, %s2208_s18 }
  0xe5   : > { %1749 = vmatpush3.bf16.msra.mxu0 %v1954_v7  ;;  %1764 = vmatprep.mubr.msk.bf16.mxu0 %vm2300_vm0, %v2299_v0  ;;  %v1996_v7 = vld [vmem:[#allocation11 + $0x10] sm:$0xff]   ;;  %p2211_p11 = pneg %p2210_p8 }
  0xe6   : > { %1750 = vmatprep.subr.bf16.mxu0 %v2299_v0  ;;  %1021 = vmatpush1.bf16.msra.mxu1 %v1973_v23  ;;  %p2217_p1 = por %p2216_p0, %p2215_p13 }
  0xe7   : > { %1022 = vmatprep.subr.bf16.mxu1 %v1974_v24 }
  0xe8   : > { %p2218_p6 = pnand %p2217_p1, %p2211_p11 }
  0xe9   : > { %1751 = vmatpush3.bf16.msra.mxu0 %v1955_v9  ;;  %v1998_v9 = vld [vmem:[#allocation11 + $0x20] sm:$0xff]  }
  0xea   : > { %1752 = vmatprep.subr.bf16.mxu0 %v2299_v0  ;;  %1023 = vmatpush1.bf16.msra.mxu1 %v1976_v25 }
  0xeb   : > { %1024 = vmatprep.subr.bf16.mxu1 %v1977_v26  ;;  %v681_v26 = vld [vmem:[%s675_s24] sm:$0xff]  ;;  %s2767_s24 = scalar_lea.hbm %s2875_s1, %s1835_s26 }
  0xed   : > { %1753 = vmatpush3.bf16.msra.mxu0 %v1956_v10  ;;  %v1999_v10 = vld [vmem:[#allocation11 + $0x28] sm:$0xff]  }
  0xee   : > { %1754 = vmatprep.subr.bf16.mxu0 %v2299_v0  ;;  %1025 = vmatpush1.bf16.msra.mxu1 %v1979_v27 }
  0xef   : > { %1026 = vmatprep.subr.bf16.mxu1 %v1980_v28 }
  0xf1   : > { %1755 = vmatpush3.bf16.msra.mxu0 %v1957_v11  ;;  %v924_v11 = vlaneseq }
  0xf2   : > { %1756 = vmatprep.subr.bf16.mxu0 %v2299_v0  ;;  %1027 = vmatpush1.bf16.msra.mxu1 %v1982_v44 }
  0xf3   : > { %1028 = vmatprep.subr.bf16.mxu1 %v1983_v45 }
  0xf5   : > { %1757 = vmatpush3.bf16.msra.mxu0 %v1958_v12  ;;  %v925_v12 = vshrl.u32 %v924_v11, 7 }
  0xf6   : > { %1758 = vmatprep.subr.bf16.mxu0 %v2299_v0  ;;  %1029 = vmatpush1.bf16.msra.mxu1 %v1985_v46 }
  0xf7   : > { %1774 = vmatprep.subr.bf16.mxu1 %v2299_v0 }
  0xf9   : > { %1759 = vmatpush3.bf16.msra.mxu0 %v1959_v13  ;;  %v926_v13 = vsub.s32 0, %v925_v12 }
  0xfa   : > { %1760 = vmatprep.subr.bf16.mxu0 %v2299_v0 }
  0xfd   : > { %1761 = vmatpush3.bf16.msra.mxu0 %v1960_v14  ;;  %v922_v14 = vld [vmem:[%s2821_s9] sm:$0x3] }
  0xfe   : > { %1762 = vmatprep.subr.bf16.mxu0 %v2299_v0  ;;  %v927_v16 = vrot.slane %v922_v14, %v926_v13 }
 0x101   : > { %1763 = vmatpush3.bf16.msra.mxu0 %v1961_v15  ;;  %v930_v15 = vsub.s32 1, %v925_v12 }
 0x102   : > { %1768 = vmatprep.subr.bf16.mxu0 %v2299_v0 }
 0x103   : > { %v931_v17 = vrot.slane %v922_v14, %v930_v15 }
 0x1af   : > { %v727_v29 = vpop.f32.mrb[0].mxu0 }
 0x1b0   : > { %v1740_v30 = vpop.f32.mrb[1].mxu0 }
 0x1b1   : > { %v730_v31 = vpop.f32.mrb[2].mxu0 }
 0x1b2   : > { %v1741_v32 = vpop.f32.mrb[3].mxu0  ;;  %v2000_v31 = vld [vmem:[#allocation11 + $0x30] sm:$0xff]  }
 0x1b3   : > { %v2001_v32 = vld [vmem:[#allocation11 + $0x38] sm:$0xff]  }
 0x1b7   : > { %v777_v33 = vpop.f32.mrb[4].mxu0 }
 0x1b8   : > { %v778_v35 = vadd.f32 %v777_v33, %v727_v29  ;;  %v1746_v36 = vpop.f32.mrb[5].mxu0  ;;  %v2002_v33 = vld [vmem:[#allocation13] sm:$0xff]  }
 0x1b9   : > { %v780_v37 = vpop.f32.mrb[6].mxu0  ;;  %v2005_v36 = vld [vmem:[#allocation13 + $0x18] sm:$0xff]  }
 0x1ba   : > { %v790_v38 = vadd.f32 %v1637_v34, %v778_v35  ;;  %v1747_v39 = vpop.f32.mrb[7].mxu0  ;;  %v2003_v34 = vld [vmem:[#allocation13 + $0x8] sm:$0xff]   ;;  %v2004_v35 = vld [vmem:[#allocation13 + $0x10] sm:$0xff]   ;;  %v2006_v37 = vld [vmem:[#allocation13 + $0x20] sm:$0xff]  }
 0x1bc   : > { %v791_v41 = vmax.f32 %v790_v38, 0.0  ;;  %v2007_v38 = vld [vmem:[#allocation13 + $0x28] sm:$0xff]  }
 0x1be   : > { %v792_v43 = vpack.c.bf16 %v791_v41, %v791_v41 }
 0x1c0   : > { %1765 = vmatmul.mubr.bf16.vlgmr.msra.gmra.mrb[8].mxu0 %v792_v43 }
 0x1c1   : > { %1769 = vmatpush3.bf16.msra.mxu0 %v1079_v42  ;;  %1770 = vmatprep.mubr.msk.bf16.mxu0 %vm2300_vm0, %v2299_v0 }
 0x1c2   : > { %1794 = vmatprep.subr.bf16.mxu0 %v2299_v0 }
 0x1c8   : > { %1771 = vmatmul.mubr.msk.bf16.vlgmr.msra.gmra.mrb[12].mxu0 %vm685_vm2, %v2652_v4  ;;  %v1995_v4 = vld [vmem:[#allocation11 + $0x8] sm:$0xff]  }
 0x1c9   : > { %1810 = vmatprep.mubr.msk.bf16.mxu0 %vm2300_vm0, %v2299_v0  ;;  %1795 = vmatpush3.bf16.msra.mxu0 %v1994_v1 }
 0x1ca   : > { %1796 = vmatprep.subr.bf16.mxu0 %v2299_v0 }
 0x1cd   : > { %1797 = vmatpush3.bf16.msra.mxu0 %v1995_v4 }
 0x1ce   : > { %1798 = vmatprep.subr.bf16.mxu0 %v2299_v0 }
 0x1d1   : > { %1799 = vmatpush3.bf16.msra.mxu0 %v1996_v7 }
 0x1d2   : > { %1800 = vmatprep.subr.bf16.mxu0 %v2299_v0 }
 0x1d5   : > { %1801 = vmatpush3.bf16.msra.mxu0 %v1997_v8 }
 0x1d6   : > { %1802 = vmatprep.subr.bf16.mxu0 %v2299_v0 }
 0x1d9   : > { %1803 = vmatpush3.bf16.msra.mxu0 %v1998_v9 }
 0x1da   : > { %1804 = vmatprep.subr.bf16.mxu0 %v2299_v0 }
 0x1dd   : > { %1805 = vmatpush3.bf16.msra.mxu0 %v1999_v10 }
 0x1de   : > { %1806 = vmatprep.subr.bf16.mxu0 %v2299_v0 }
 0x1e1   : > { %1807 = vmatpush3.bf16.msra.mxu0 %v2000_v31 }
 0x1e2   : > { %1808 = vmatprep.subr.bf16.mxu0 %v2299_v0 }
 0x1e5   : > { %1809 = vmatpush3.bf16.msra.mxu0 %v2001_v32 }
 0x293   : > { %v898_v49 = vpop.f32.mrb[8].mxu0 }
 0x294   : > { %v899_v50 = vadd.f32 %v1638_v48, %v898_v49  ;;  %v1766_v51 = vpop.f32.mrb[9].mxu0  ;;  %v2008_v48 = vld [vmem:[#allocation13 + $0x30] sm:$0xff]   ;;  %v2009_v49 = vld [vmem:[#allocation13 + $0x38] sm:$0xff]  }
 0x295   : > { %v901_v52 = vpop.f32.mrb[10].mxu0 }
 0x296   : > { %v904_v53 = vmax.f32 %v899_v50, 0.0  ;;  %v1767_v54 = vpop.f32.mrb[11].mxu0  ;;  %v1673_v50 = vld [vmem:[%s2872_s0] ss:$0 sm:$0xff] }
 0x298   : > { %v905_v56 = vpack.c.bf16 %v904_v53, %v904_v53 }
 0x29a   : > { %1047 = vmatmul.mubr.bf16.vlgmr.msra.gmra.mrb[0].mxu1 %v905_v56 }
 0x29b   : > { %1775 = vmatpush3.bf16.msra.mxu1 %v1986_v55  ;;  %1790 = vmatprep.mubr.msk.bf16.mxu1 %vm2300_vm0, %v2299_v0  ;;  %v2720_v2 = vpop.f32.mrb[12].mxu0 }
 0x29c   : > { %1776 = vmatprep.subr.bf16.mxu1 %v2299_v0  ;;  %v1772_v3 = vpop.f32.mrb[13].mxu0 }
 0x29d   : > { %v1118_v5 = vpop.f32.mrb[14].mxu0 }
 0x29e   : > { %v1773_v6 = vpop.f32.mrb[15].mxu0 }
 0x29f   : > { %1777 = vmatpush3.bf16.msra.mxu1 %v1987_v57 }
 0x2a0   : > { %1778 = vmatprep.subr.bf16.mxu1 %v2299_v0 }
 0x2a3   : > { %1779 = vmatpush3.bf16.msra.mxu1 %v1988_v58 }
 0x2a4   : > { %1780 = vmatprep.subr.bf16.mxu1 %v2299_v0 }
 0x2a7   : > { %1781 = vmatpush3.bf16.msra.mxu1 %v1989_v59 }
 0x2a8   : > { %1782 = vmatprep.subr.bf16.mxu1 %v2299_v0 }
 0x2ab   : > { %1783 = vmatpush3.bf16.msra.mxu1 %v1990_v60 }
 0x2ac   : > { %1784 = vmatprep.subr.bf16.mxu1 %v2299_v0 }
 0x2af   : > { %1785 = vmatpush3.bf16.msra.mxu1 %v1991_v61 }
 0x2b0   : > { %1786 = vmatprep.subr.bf16.mxu1 %v2299_v0 }
 0x2b3   : > { %1787 = vmatpush3.bf16.msra.mxu1 %v1992_v62 }
 0x2b4   : > { %1788 = vmatprep.subr.bf16.mxu1 %v2299_v0 }
 0x2b7   : > { %1789 = vmatpush3.bf16.msra.mxu1 %v1993_v63 }
 0x2b8   : > { %1814 = vmatprep.subr.bf16.mxu1 %v2299_v0 }
 0x36d   : > { %v1048_v18 = vpop.f32.mrb[0].mxu1 }
 0x36e   : > { %v1049_v19 = vadd.f32 %v1048_v18, %v927_v16  ;;  %v1050_v20 = vpop.f32.mrb[1].mxu1 }
 0x36f   : > { %v1051_v21 = vadd.f32 %v1050_v20, %v931_v17  ;;  %v1052_v22 = vpop.f32.mrb[2].mxu1 }
 0x370   : > { %1444 = vst [vmem:[%s2734_s22 + $0x8] sm:$0xff] %v1049_v19  ;;  %v1053_v23 = vpop.f32.mrb[3].mxu1 }
 0x371   : > { %v1055_v24 = vmul.f32 0.5, %v1051_v21  ;;  %1445 = vst [vmem:[%s2734_s22 + $0x10] sm:$0xff] %v1051_v21 }
 0x373   : > { %v1056_v25 = vmul.f32 1.442695, %v1055_v24 }
 0x375   : > { %2010 = vpow2.f32 %v1056_v25 }
 0x37f   : > { %v2011_v27 = vpop.eup %2010 }
 0x380   : > { %v1058_v28 = vmul.f32 %v2011_v27, %v681_v26 }
 0x382   : > { %v1059_v29 = vadd.f32 %v1058_v28, %v1049_v19 }
 0x384   : > { %v1060_v30 = vpack.c.bf16 %v1059_v29, %v1059_v29 }
 0x386   : > { %1791 = vmatmul.mubr.bf16.vlgmr.msra.gmra.mrb[4].mxu1 %v1060_v30 }
 0x387   : > { %1830 = vmatprep.mubr.msk.bf16.mxu1 %vm2300_vm0, %v2299_v0  ;;  %1815 = vmatpush3.bf16.msra.mxu1 %v2002_v33 }
 0x388   : > { %1816 = vmatprep.subr.bf16.mxu1 %v2299_v0 }
 0x38b   : > { %1817 = vmatpush3.bf16.msra.mxu1 %v2003_v34 }
 0x38c   : > { %1818 = vmatprep.subr.bf16.mxu1 %v2299_v0 }
 0x38f   : > { %1819 = vmatpush3.bf16.msra.mxu1 %v2004_v35 }
 0x390   : > { %1820 = vmatprep.subr.bf16.mxu1 %v2299_v0 }
 0x393   : > { %1821 = vmatpush3.bf16.msra.mxu1 %v2005_v36 }
 0x394   : > { %1822 = vmatprep.subr.bf16.mxu1 %v2299_v0 }
 0x397   : > { %1823 = vmatpush3.bf16.msra.mxu1 %v2006_v37 }
 0x398   : > { %1824 = vmatprep.subr.bf16.mxu1 %v2299_v0 }
 0x39b   : > { %1825 = vmatpush3.bf16.msra.mxu1 %v2007_v38 }
 0x39c   : > { %1826 = vmatprep.subr.bf16.mxu1 %v2299_v0 }
 0x39f   : > { %1827 = vmatpush3.bf16.msra.mxu1 %v2008_v48 }
 0x3a0   : > { %1828 = vmatprep.subr.bf16.mxu1 %v2299_v0  ;;  %v1682_v0 = vld [vmem:[%s2874_s17] ss:$0 sm:$0xff] }
 0x3a3   : > { %1829 = vmatpush3.bf16.msra.mxu1 %v2009_v49 }
 0x459   : > { %v1203_v39 = vpop.f32.mrb[4].mxu1 }
 0x45a   : > { %v1204_v41 = vadd.f32 %v1203_v39, %v2720_v2  ;;  %v1792_v42 = vpop.f32.mrb[5].mxu1 }
 0x45b   : > { %v1206_v43 = vpop.f32.mrb[6].mxu1 }
 0x45c   : > { %v1216_v44 = vadd.f32 %v1672_v40, %v1204_v41  ;;  %v1793_v45 = vpop.f32.mrb[7].mxu1 }
 0x45e   : > { %v1217_v46 = vmax.f32 %v1216_v44, 0.0 }
 0x460   : > { %v1218_v47 = vpack.c.bf16 %v1217_v46, %v1217_v46 }
 0x462   : > { %1811 = vmatmul.mubr.bf16.vlgmr.msra.gmra.mrb[16].mxu0 %v1218_v47 }
 0x535   : > { %v1324_v51 = vpop.f32.mrb[16].mxu0 }
 0x536   : > { %v1325_v52 = vadd.f32 %v1673_v50, %v1324_v51  ;;  %v1812_v53 = vpop.f32.mrb[17].mxu0 }
 0x537   : > { %v1327_v54 = vpop.f32.mrb[18].mxu0 }
 0x538   : > { %v1330_v55 = vmax.f32 %v1325_v52, 0.0  ;;  %v1813_v56 = vpop.f32.mrb[19].mxu0 }
 0x53a   : > { %v1331_v57 = vpack.c.bf16 %v1330_v55, %v1330_v55 }
 0x53c   : > { %1831 = vmatmul.mubr.bf16.vlgmr.msra.gmra.mrb[8].mxu1 %v1331_v57 }
 0x60f   : > { %v1437_v58 = vpop.f32.mrb[8].mxu1 }
 0x610   : > { %v1438_v59 = vadd.f32 %v1682_v0, %v1437_v58  ;;  %v1832_v60 = vpop.f32.mrb[9].mxu1 }
 0x611   : > { %v1440_v61 = vpop.f32.mrb[10].mxu1 }
 0x612   : > { %1443 = vst [vmem:[%s2734_s22] sm:$0xff] %v1438_v59  ;;  %v1833_v62 = vpop.f32.mrb[11].mxu1 }
 0x613   : > { %2221 = shalt.err (!%p2218_p6)
}
 0x614   : > { %s2222_s29 = scalar_lea.hbm %s2767_s24, 384  ;;  %s2226_s26 = scalar_lea.hbm %s2875_s1, 1152 }
 0x615   : > { %p2223_p5 = scmp.ne.s32.totalorder %s2767_s24, %s2222_s29  ;;  %p2227_p10 = scmp.lt.u32.totalorder %s2767_s24, %s2875_s1 }
 0x616   : > { %p2228_p2 = scmp.lt.u32.totalorder %s2226_s26, %s2222_s29  ;;  %p2230_p4 = scmp.lt.u32.totalorder %s2222_s29, %s2767_s24 }
 0x617   : > { %p2224_p9 = pnand %p2223_p5, %p2876_p7 }
 0x618   : > { %p2229_p3 = por %p2228_p2, %p2227_p10 }
 0x619   : > { %p2225_p12 = pneg %p2224_p9 }
 0x61a   : > { %p2231_p8 = por %p2230_p4, %p2229_p3 }
 0x61c   : > { %p2232_p11 = pnand %p2231_p8, %p2225_p12 }
 0x61e   : > { %2235 = shalt.err (!%p2232_p11)
}
 0x61f   : > { %1864 = dma.vmem_to_hbm [thread:$0]  (%p2876_p7), %s2769_s27, 384, %s2767_s24, %s1447_s28  }
 0x620 PF: > { %s2877_s17 = sld [smem:[#allocation22_spill]]  ;;  %s2878_s21 = sld [smem:[#allocation20_spill]] }
 0x621   : > { %s2879_s14 = sld [smem:[#allocation26_spill]] }
 0x626   : > { %p1906_p13 = scmp.ge.s32.totalorder %s2877_s17, 2  ;;  %s1473_s18 = sand.u32 1, %s2878_s21  }
 0x627   : > { %p2880_p0 = scmp.ne.s32.totalorder %s2879_s14, 0  ;;  %s1474_s23 = scalar_lea.sflag [#allocation4], %s1473_s18 }
 0x629   : > { %p1889_p1 = pnand %p1906_p13, %p2880_p0 }
 0x62b   : > { %2269 = dma.done.wait (!%p1889_p1), %s1474_s23, 384  }
 0x62c   : > { %2271 = vsyncadd (!%p1889_p1), %s1474_s23, 4294966912  ;;  %s2881_s27 = sld [smem:[#allocation23_spill]]  ;;  %s2882_s19 = sld [smem:[#allocation21_spill]] }
 0x62d   : > { %s2883_s26 = sld [smem:[#allocation24_spill]]  ;;  %s2884_s24 = smov %s2278_s25 }
 0x632   : > { %p31_p6 = scmp.ge.s32.totalorder %s2881_s27, 5   ;;  %s2885_s25 = smov %s2882_s19 }
 0x634   :  { %33 = sbr.rel (!%p31_p6) target bundleno = 14 (0xe), region = 158 }
 0x63b   :  { %1479 = vsyncpa [#allocation3], 1 }
 0x63c   :  { %1481 = vsyncpa [#allocation3 + $0x1], 1 }
 0x63d   :  { %1482 = vsyncpa [#allocation6], 1 }
 0x63e   :  { %1483 = vsyncpa [#allocation9], 1 }
 0x63f   :  { %1484 = vsyncpa [#allocation12], 1 }
 0x640   :  { %1485 = vsyncpa [#allocation4], 1 }
 0x641   :  { %1487 = vsyncpa [#allocation4 + $0x1], 1 }

</bundles_post_ra>
